<compile_context>
chip_gen: v7x
topology: tpu7x:2x2x1
jax: 0.10.0
libtpu: 0.0.40
codegen_flags: <defaults>
</compile_context>

<pallas_src>
import numpy as np
import jax
import jax.numpy as jnp
from jax.experimental import pallas as pl
from jax.experimental.pallas import tpu as pltpu

NUM_CHANNELS = 4      # configs.ParamsConfig.NUM_CHANNELS (small synthetic value)
LATENT_DIMS = 8       # configs.ParamsConfig.LATENT_DIMS  (small synthetic value)
POOL_H = 20           # AdaptiveMaxPool2d target (20, 1)

# conv hyper-parameters fixed by the PyTorch module
KH1, KW1, SH1, PH1, PW1 = 7, 5, 3, 1, 2
KH2, KW2, SH2, PH2, PW2 = 5, 3, 3, 1, 1

# TODO(synk): the PyTorch forward also sets a Python global `input_shape`
# (pure side effect); there is no kernel equivalent, so it is omitted.


# --------------------------- static geometry -------------------------------- #

def _geometry(h, w):
    h1 = (h + 2 * PH1 - KH1) // SH1 + 1
    wid1 = w + 2 * PW1 - KW1 + 1
    h2 = (h1 + 2 * PH2 - KH2) // SH2 + 1
    wid2 = wid1 + 2 * PW2 - KW2 + 1
    # padded conv2-input row slots per residue (space-to-depth over H)
    q_blocks = (KH2 - 1) // SH2 + h2
    return h1, wid1, h2, wid2, q_blocks


# ----------------------------- fused kernel --------------------------------- #

def _make_kernel(c1, c2, wid1, wid2, h2, b_tile, q_blocks, zero_blocks):
    cols1 = c1 * wid1
    r2 = h2 * b_tile

    def kernel(l1_ref, m1_ref, b1_ref, m2_ref, b2_ref, wh_ref, bh_ref,
               pmask_ref, out_ref, y1_ref):
        # ---- conv1 + bias + ReLU: one MXU matmul over the whole batch tile.
        y1 = jnp.dot(l1_ref[0], m1_ref[...], preferred_element_type=jnp.float32)
        y1_ref[...] = jnp.maximum(y1 + b1_ref[...], 0.0)

        # Zero only the conv2 H-padding rows that conv2 actually reads
        # (computed statically in Python; usually a single tiny store).
        for rs, nr in zero_blocks:
            y1_ref[rs:rs + nr, :] = jnp.zeros((nr, cols1), jnp.float32)

        # ---- conv2: KH2 accumulated MXU matmuls on contiguous row slabs of y1.
        acc = jnp.zeros((r2, c2 * wid2), jnp.float32)
        for i in range(KH2):
            rs = ((i % SH2) * q_blocks + i // SH2) * b_tile
            acc = acc + jnp.dot(y1_ref[rs:rs + r2, :], m2_ref[i],
                                preferred_element_type=jnp.float32)
        act2 = jnp.maximum(acc + b2_ref[...], 0.0)            # (r2, C2*W2)
        act2 = act2.reshape(h2, b_tile, c2 * wid2)            # rows were (h, b)

        # ---- ReLU + AdaptiveMaxPool2d((POOL_H, 1)) + flatten.
        # Post-ReLU activations are finite and >= 0, so the additive -1e30
        # bin mask cleanly selects each adaptive-pool bin.
        pmask = pmask_ref[...]                                # (h2, 1, POOL_H)
        feats = []
        for co in range(c2):
            seg = act2[:, :, co * wid2:(co + 1) * wid2]       # (h2, bt, W2)
            rowmax = jnp.max(seg, axis=-1, keepdims=True)     # (h2, bt, 1)
            feats.append(jnp.max(rowmax + pmask, axis=0))     # (bt, POOL_H)
        flat = jnp.concatenate(feats, axis=-1)                # (bt, C2*POOL_H)

        # ---- fused mu / logvar heads (single MXU matmul for the batch tile).
        out_ref[...] = (jnp.dot(flat, wh_ref[...],
                                preferred_element_type=jnp.float32)
                        + bh_ref[...])

    return kernel


# ------------------------------ forward -------------------------------------- #

def encoder_forward(packed, x):
    """Returns (mu, logvar), each (N, LATENT_DIMS)."""
    n, cin, h, w = x.shape
    assert cin == 1
    h1, wid1, h2, wid2, q_blocks = _geometry(h, w)
    c1 = packed["b1row"].shape[1] // wid1
    c2 = packed["b2row"].shape[1] // wid2
    lat2 = packed["b_heads"].shape[1]

    # Batch tiling: up to 8 images per grid step (fills the 8 sublanes); for
    # the demo batch of 16 this gives 2 parallel grid steps (one per v7x TC).
    b_tile = min(8, n)
    n_pad = -(-n // b_tile) * b_tile
    nb = n_pad // b_tile

    # --- XLA-side layout plumbing on the raw input (read from HBM anyway):
    # conv1 im2col patch matrix whose rows are ordered (residue, q, batch) --
    # i.e. the space-to-depth order of the padded conv2 input -- and whose
    # columns are (kh tap, input column).
    top = PH1 + SH1 * PH2
    max_row = SH1 * SH2 * (q_blocks - 1) + SH1 * (SH2 - 1) + (KH1 - 1)
    bot = max(0, max_row - (top + h - 1))
    xb = jnp.pad(x[:, 0], ((0, n_pad - n), (top, bot), (0, 0)))
    row_idx = (SH1 * SH2 * np.arange(q_blocks)[None, :, None]
               + SH1 * np.arange(SH2)[:, None, None]
               + np.arange(KH1)[None, None, :]).astype(np.int32)
    xb = xb.reshape(nb, b_tile, xb.shape[1], w)
    l1 = jnp.take(xb, jnp.asarray(row_idx.reshape(-1)), axis=2)
    l1 = l1.reshape(nb, b_tile, SH2, q_blocks, KH1, w)
    l1 = l1.transpose(0, 2, 3, 1, 4, 5).reshape(
        nb, SH2 * q_blocks * b_tile, KH1 * w)

    # conv2 H-padding row blocks (read by conv2 but not produced by conv1).
    read = set()
    for i in range(KH2):
        for q in range(i // SH2, i // SH2 + h2):
            read.add((i % SH2, q))
    zero_blocks = []
    for (r, q) in sorted(read):
        if not 0 <= SH2 * q + r - PH2 < h1:
            zero_blocks.append(((r * q_blocks + q) * b_tile, b_tile))

    kernel = _make_kernel(c1, c2, wid1, wid2, h2, b_tile, q_blocks, zero_blocks)
    r1 = SH2 * q_blocks * b_tile

    out = pl.pallas_call(
        kernel,
        out_shape=jax.ShapeDtypeStruct((n_pad, lat2), jnp.float32),
        grid=(nb,),
        in_specs=[
            pl.BlockSpec((1, r1, KH1 * w), lambda ib: (ib, 0, 0)),        # L1
            pl.BlockSpec(packed["m1"].shape, lambda ib: (0, 0)),          # conv1 mat
            pl.BlockSpec(packed["b1row"].shape, lambda ib: (0, 0)),       # conv1 bias
            pl.BlockSpec(packed["m2"].shape, lambda ib: (0, 0, 0)),       # conv2 mats
            pl.BlockSpec(packed["b2row"].shape, lambda ib: (0, 0)),       # conv2 bias
            pl.BlockSpec(packed["w_heads"].shape, lambda ib: (0, 0)),     # fused heads
            pl.BlockSpec(packed["b_heads"].shape, lambda ib: (0, 0)),
            pl.BlockSpec(packed["pmask"].shape, lambda ib: (0, 0, 0)),    # pool mask
        ],
        out_specs=pl.BlockSpec((b_tile, lat2), lambda ib: (ib, 0)),
        scratch_shapes=[pltpu.VMEM((r1, c1 * wid1), jnp.float32)],        # conv1 out
        compiler_params=pltpu.CompilerParams(
            dimension_semantics=("parallel",)),
    )(l1, packed["m1"], packed["b1row"], packed["m2"], packed["b2row"],
      packed["w_heads"], packed["b_heads"], packed["pmask"])

    out = out[:n]
    lat = lat2 // 2
    return out[:, :lat], out[:, lat:]


# --------------------------- parameter handling ------------------------------ #

def init_params(key, num_channels=NUM_CHANNELS, latent_dims=LATENT_DIMS):
    c = num_channels
    ks = jax.random.split(key, 8)

    def unif(k, shape, fan_in):
        bound = 1.0 / float(fan_in) ** 0.5
        return jax.random.uniform(k, shape, jnp.float32, -bound, bound)

    return {
        "w1": unif(ks[0], (c, 1, KH1, KW1), 1 * KH1 * KW1),
        "b1": unif(ks[1], (c,), 1 * KH1 * KW1),
        "w2": unif(ks[2], (2 * c, c, KH2, KW2), c * KH2 * KW2),
        "b2": unif(ks[3], (2 * c,), c * KH2 * KW2),
        "w_mu": unif(ks[4], (latent_dims, 2 * c * POOL_H), 2 * c * POOL_H),
        "b_mu": unif(ks[5], (latent_dims,), 2 * c * POOL_H),
        "w_lv": unif(ks[6], (latent_dims, 2 * c * POOL_H), 2 * c * POOL_H),
        "b_lv": unif(ks[7], (latent_dims,), 2 * c * POOL_H),
    }


def pack_params(params, h, w):
    """One-time repack: banded conv matrices for the MXU, lane-packed biases,
    fused mu/logvar head, adaptive-pool mask.  No per-forward weight work."""
    h1, wid1, h2, wid2, _ = _geometry(h, w)
    w1 = np.asarray(params["w1"], np.float32)
    w2 = np.asarray(params["w2"], np.float32)
    b1 = np.asarray(params["b1"], np.float32)
    b2 = np.asarray(params["b2"], np.float32)
    c1, c2 = b1.shape[0], b2.shape[0]

    # conv1: L1 (rows, KH1*w) @ m1 (KH1*w, c1*wid1); W-padding folded in band.
    m1 = np.zeros((KH1 * w, c1 * wid1), np.float32)
    for c in range(c1):
        for i in range(KH1):
            for wo in range(wid1):
                for j in range(KW1):
                    wi = wo + j - PW1
                    if 0 <= wi < w:
                        m1[i * w + wi, c * wid1 + wo] = w1[c, 0, i, j]

    # conv2: sum_i y1[slab_i] (rows, c1*wid1) @ m2[i] (c1*wid1, c2*wid2).
    m2 = np.zeros((KH2, c1 * wid1, c2 * wid2), np.float32)
    for i in range(KH2):
        for co in range(c2):
            for ci in range(c1):
                for wo in range(wid2):
                    for j in range(KW2):
                        wi = wo + j - PW2
                        if 0 <= wi < wid1:
                            m2[i, ci * wid1 + wi, co * wid2 + wo] = w2[co, ci, i, j]

    # adaptive max-pool additive bin mask (0 where row h belongs to bin p).
    pmask = np.full((h2, 1, POOL_H), -1e30, np.float32)
    for p in range(POOL_H):
        s = (p * h2) // POOL_H
        e = -(-((p + 1) * h2) // POOL_H)
        pmask[s:e, 0, p] = 0.0

    return {
        "m1": jnp.asarray(m1),
        "b1row": jnp.asarray(np.repeat(b1, wid1)[None, :]),
        "m2": jnp.asarray(m2),
        "b2row": jnp.asarray(np.repeat(b2, wid2)[None, :]),
        "w_heads": jnp.concatenate([params["w_mu"].T, params["w_lv"].T], axis=1),
        "b_heads": jnp.concatenate([params["b_mu"], params["b_lv"]])[None, :],
        "pmask": jnp.asarray(pmask),
    }


# -------------------------------- reference ---------------------------------- #

def reference_forward(params, x):
    hp = jax.lax.Precision.HIGHEST
    dn1 = jax.lax.conv_dimension_numbers(x.shape, params["w1"].shape,
                                         ("NCHW", "OIHW", "NCHW"))
    y1 = jax.lax.conv_general_dilated(x, params["w1"], (SH1, 1),
                                      ((PH1, PH1), (PW1, PW1)),
                                      dimension_numbers=dn1, precision=hp)
    y1 = jax.nn.relu(y1 + params["b1"][None, :, None, None])
    dn2 = jax.lax.conv_dimension_numbers(y1.shape, params["w2"].shape,
                                         ("NCHW", "OIHW", "NCHW"))
    y2 = jax.lax.conv_general_dilated(y1, params["w2"], (SH2, 1),
                                      ((PH2, PH2), (PW2, PW2)),
                                      dimension_numbers=dn2, precision=hp)
    y2 = jax.nn.relu(y2 + params["b2"][None, :, None, None])
    b, c2, h2, _ = y2.shape
    yw = jnp.max(y2, axis=3)
    rows = []
    for i in range(POOL_H):
        s = (i * h2) // POOL_H
        e = -(-((i + 1) * h2) // POOL_H)
        rows.append(jnp.max(yw[:, :, s:e], axis=2))
    flat = jnp.stack(rows, axis=2).reshape(b, -1)
    mu = jnp.dot(flat, params["w_mu"].T, precision=hp) + params["b_mu"]
    lv = jnp.dot(flat, params["w_lv"].T, precision=hp) + params["b_lv"]
    return mu, lv


# ---------------------------------- main -------------------------------------- #

if __name__ == "__main__":
    key = jax.random.PRNGKey(0)
    kp, kx = jax.random.split(key)
    params = init_params(kp)

    # Input: batch=16, in_channels=1, H=64, W=16 (NCHW, like the PyTorch module).
    # batch=16 -> two batch-tiled grid steps so both v7x TensorCores get work.
    x = jax.random.normal(kx, (16, 1, 64, 16), jnp.float32)

    packed = pack_params(params, x.shape[2], x.shape[3])
    fwd = jax.jit(encoder_forward)
    mu, logvar = fwd(packed, x)
    jax.block_until_ready((mu, logvar))

    mu_ref, lv_ref = reference_forward(params, x)
    assert mu.shape == (16, LATENT_DIMS) and logvar.shape == (16, LATENT_DIMS)
    # Tightened from 2e-2: 5e-3 leaves headroom for the MXU's f32 pass
    # decomposition vs. the HIGHEST-precision reference while still catching
    # any real indexing/weight-packing bug (those show up as O(0.1) errors).
    assert jnp.allclose(mu, mu_ref, atol=5e-3, rtol=5e-3)
    assert jnp.allclose(logvar, lv_ref, atol=5e-3, rtol=5e-3)

    print("KERNEL_OK")
</pallas_src>

<mosaic_0001>
module attributes {stable_mosaic.version = 11 : i64} {
  func.func @kernel(%arg0: i32, %arg1: memref<1x168x112xf32, #tpu.memory_space<vmem>>, %arg2: memref<112x64xf32, #tpu.memory_space<vmem>>, %arg3: memref<1x64xf32, #tpu.memory_space<vmem>>, %arg4: memref<5x64x128xf32, #tpu.memory_space<vmem>>, %arg5: memref<1x128xf32, #tpu.memory_space<vmem>>, %arg6: memref<160x16xf32, #tpu.memory_space<vmem>>, %arg7: memref<1x16xf32, #tpu.memory_space<vmem>>, %arg8: memref<6x1x20xf32, #tpu.memory_space<vmem>>, %arg9: memref<8x16xf32, #tpu.memory_space<vmem>>, %arg10: memref<168x64xf32, #tpu.memory_space<vmem>>) attributes {dimension_semantics = [#tpu.dimension_semantics<parallel>], iteration_bounds = array<i64: 2>, scalar_prefetch = 0 : i64, scratch_operands = 1 : i64, tpu.core_type = #tpu.core_type<tc>, window_params = [{transform_indices = @transform_0, window_bounds = array<i64: 1, 168, 112>}, {pipeline_mode = #tpu.pipeline_mode<synchronous>, transform_indices = @transform_1, window_bounds = array<i64: 112, 64>}, {pipeline_mode = #tpu.pipeline_mode<synchronous>, transform_indices = @transform_2, window_bounds = array<i64: 1, 64>}, {pipeline_mode = #tpu.pipeline_mode<synchronous>, transform_indices = @transform_3, window_bounds = array<i64: 5, 64, 128>}, {pipeline_mode = #tpu.pipeline_mode<synchronous>, transform_indices = @transform_4, window_bounds = array<i64: 1, 128>}, {pipeline_mode = #tpu.pipeline_mode<synchronous>, transform_indices = @transform_5, window_bounds = array<i64: 160, 16>}, {pipeline_mode = #tpu.pipeline_mode<synchronous>, transform_indices = @transform_6, window_bounds = array<i64: 1, 16>}, {pipeline_mode = #tpu.pipeline_mode<synchronous>, transform_indices = @transform_7, window_bounds = array<i64: 6, 1, 20>}, {transform_indices = @transform_8, window_bounds = array<i64: 8, 16>}]} {
    %c0 = arith.constant 0 : index
    %c0_0 = arith.constant 0 : index
    %c0_1 = arith.constant 0 : index
    %0 = vector.load %arg1[%c0, %c0_0, %c0_1] : memref<1x168x112xf32, #tpu.memory_space<vmem>>, vector<1x168x112xf32>
    %1 = vector.shape_cast %0 : vector<1x168x112xf32> to vector<168x112xf32>
    %c0_2 = arith.constant 0 : index
    %c0_3 = arith.constant 0 : index
    %2 = vector.load %arg2[%c0_2, %c0_3] : memref<112x64xf32, #tpu.memory_space<vmem>>, vector<112x64xf32>
    %cst = arith.constant dense<0.000000e+00> : vector<168x64xf32>
    %3 = tpu.matmul %1, %2, %cst {dimension_numbers = #tpu.dot_dimension_numbers<[1], [0], [0], [1], [0, 0, 1, 1], [], []>} : vector<168x112xf32>, vector<112x64xf32>, vector<168x64xf32> -> vector<168x64xf32>
    %c0_4 = arith.constant 0 : index
    %c0_5 = arith.constant 0 : index
    %4 = vector.load %arg3[%c0_4, %c0_5] : memref<1x64xf32, #tpu.memory_space<vmem>>, vector<1x64xf32>
    %5 = vector.broadcast %4 : vector<1x64xf32> to vector<168x64xf32>
    %6 = arith.addf %3, %5 : vector<168x64xf32>
    %cst_6 = arith.constant 0.000000e+00 : f32
    %7 = vector.broadcast %cst_6 : f32 to vector<168x64xf32>
    %8 = arith.maximumf %6, %7 : vector<168x64xf32>
    %c0_7 = arith.constant 0 : index
    %c0_8 = arith.constant 0 : index
    %9 = vector.load %arg10[%c0_7, %c0_8] : memref<168x64xf32, #tpu.memory_space<vmem>>, vector<168x64xf32>
    tpu.vector_store %arg10[%c0_7, %c0_8], %8 {strides = array<i32>} : memref<168x64xf32, #tpu.memory_space<vmem>>, vector<168x64xf32>,
    %cst_9 = arith.constant 0.000000e+00 : f32
    %10 = vector.broadcast %cst_9 : f32 to vector<8x64xf32>
    %c0_10 = arith.constant 0 : index
    %c0_11 = arith.constant 0 : index
    %11 = vector.load %arg10[%c0_10, %c0_11] : memref<168x64xf32, #tpu.memory_space<vmem>>, vector<8x64xf32>
    tpu.vector_store %arg10[%c0_10, %c0_11], %10 {strides = array<i32>} : memref<168x64xf32, #tpu.memory_space<vmem>>, vector<8x64xf32>,
    %cst_12 = arith.constant 0.000000e+00 : f32
    %12 = vector.broadcast %cst_12 : f32 to vector<48x128xf32>
    %c0_13 = arith.constant 0 : index
    %c0_14 = arith.constant 0 : index
    %13 = vector.load %arg10[%c0_13, %c0_14] : memref<168x64xf32, #tpu.memory_space<vmem>>, vector<48x64xf32>
    %c0_15 = arith.constant 0 : index
    %c0_16 = arith.constant 0 : index
    %c0_17 = arith.constant 0 : index
    %14 = vector.load %arg4[%c0_15, %c0_16, %c0_17] : memref<5x64x128xf32, #tpu.memory_space<vmem>>, vector<1x64x128xf32>
    %15 = vector.shape_cast %14 : vector<1x64x128xf32> to vector<64x128xf32>
    %cst_18 = arith.constant dense<0.000000e+00> : vector<48x128xf32>
    %16 = tpu.matmul %13, %15, %cst_18 {dimension_numbers = #tpu.dot_dimension_numbers<[1], [0], [0], [1], [0, 0, 1, 1], [], []>} : vector<48x64xf32>, vector<64x128xf32>, vector<48x128xf32> -> vector<48x128xf32>
    %17 = arith.addf %12, %16 : vector<48x128xf32>
    %c56 = arith.constant 56 : index
    %c0_19 = arith.constant 0 : index
    %18 = vector.load %arg10[%c56, %c0_19] : memref<168x64xf32, #tpu.memory_space<vmem>>, vector<48x64xf32>
    %c1 = arith.constant 1 : index
    %c0_20 = arith.constant 0 : index
    %c0_21 = arith.constant 0 : index
    %19 = vector.load %arg4[%c1, %c0_20, %c0_21] : memref<5x64x128xf32, #tpu.memory_space<vmem>>, vector<1x64x128xf32>
    %20 = vector.shape_cast %19 : vector<1x64x128xf32> to vector<64x128xf32>
    %cst_22 = arith.constant dense<0.000000e+00> : vector<48x128xf32>
    %21 = tpu.matmul %18, %20, %cst_22 {dimension_numbers = #tpu.dot_dimension_numbers<[1], [0], [0], [1], [0, 0, 1, 1], [], []>} : vector<48x64xf32>, vector<64x128xf32>, vector<48x128xf32> -> vector<48x128xf32>
    %22 = arith.addf %17, %21 : vector<48x128xf32>
    %c112 = arith.constant 112 : index
    %c0_23 = arith.constant 0 : index
    %23 = vector.load %arg10[%c112, %c0_23] : memref<168x64xf32, #tpu.memory_space<vmem>>, vector<48x64xf32>
    %c2 = arith.constant 2 : index
    %c0_24 = arith.constant 0 : index
    %c0_25 = arith.constant 0 : index
    %24 = vector.load %arg4[%c2, %c0_24, %c0_25] : memref<5x64x128xf32, #tpu.memory_space<vmem>>, vector<1x64x128xf32>
    %25 = vector.shape_cast %24 : vector<1x64x128xf32> to vector<64x128xf32>
    %cst_26 = arith.constant dense<0.000000e+00> : vector<48x128xf32>
    %26 = tpu.matmul %23, %25, %cst_26 {dimension_numbers = #tpu.dot_dimension_numbers<[1], [0], [0], [1], [0, 0, 1, 1], [], []>} : vector<48x64xf32>, vector<64x128xf32>, vector<48x128xf32> -> vector<48x128xf32>
    %27 = arith.addf %22, %26 : vector<48x128xf32>
    %c8 = arith.constant 8 : index
    %c0_27 = arith.constant 0 : index
    %28 = vector.load %arg10[%c8, %c0_27] : memref<168x64xf32, #tpu.memory_space<vmem>>, vector<48x64xf32>
    %c3 = arith.constant 3 : index
    %c0_28 = arith.constant 0 : index
    %c0_29 = arith.constant 0 : index
    %29 = vector.load %arg4[%c3, %c0_28, %c0_29] : memref<5x64x128xf32, #tpu.memory_space<vmem>>, vector<1x64x128xf32>
    %30 = vector.shape_cast %29 : vector<1x64x128xf32> to vector<64x128xf32>
    %cst_30 = arith.constant dense<0.000000e+00> : vector<48x128xf32>
    %31 = tpu.matmul %28, %30, %cst_30 {dimension_numbers = #tpu.dot_dimension_numbers<[1], [0], [0], [1], [0, 0, 1, 1], [], []>} : vector<48x64xf32>, vector<64x128xf32>, vector<48x128xf32> -> vector<48x128xf32>
    %32 = arith.addf %27, %31 : vector<48x128xf32>
    %c64 = arith.constant 64 : index
    %c0_31 = arith.constant 0 : index
    %33 = vector.load %arg10[%c64, %c0_31] : memref<168x64xf32, #tpu.memory_space<vmem>>, vector<48x64xf32>
    %c4 = arith.constant 4 : index
    %c0_32 = arith.constant 0 : index
    %c0_33 = arith.constant 0 : index
    %34 = vector.load %arg4[%c4, %c0_32, %c0_33] : memref<5x64x128xf32, #tpu.memory_space<vmem>>, vector<1x64x128xf32>
    %35 = vector.shape_cast %34 : vector<1x64x128xf32> to vector<64x128xf32>
    %cst_34 = arith.constant dense<0.000000e+00> : vector<48x128xf32>
    %36 = tpu.matmul %33, %35, %cst_34 {dimension_numbers = #tpu.dot_dimension_numbers<[1], [0], [0], [1], [0, 0, 1, 1], [], []>} : vector<48x64xf32>, vector<64x128xf32>, vector<48x128xf32> -> vector<48x128xf32>
    %37 = arith.addf %32, %36 : vector<48x128xf32>
    %c0_35 = arith.constant 0 : index
    %c0_36 = arith.constant 0 : index
    %38 = vector.load %arg5[%c0_35, %c0_36] : memref<1x128xf32, #tpu.memory_space<vmem>>, vector<1x128xf32>
    %39 = vector.broadcast %38 : vector<1x128xf32> to vector<48x128xf32>
    %40 = arith.addf %37, %39 : vector<48x128xf32>
    %cst_37 = arith.constant 0.000000e+00 : f32
    %41 = vector.broadcast %cst_37 : f32 to vector<48x128xf32>
    %42 = arith.maximumf %40, %41 : vector<48x128xf32>
    %43 = vector.shape_cast %42 : vector<48x128xf32> to vector<6x8x128xf32>
    %c0_38 = arith.constant 0 : index
    %c0_39 = arith.constant 0 : index
    %c0_40 = arith.constant 0 : index
    %44 = vector.load %arg8[%c0_38, %c0_39, %c0_40] : memref<6x1x20xf32, #tpu.memory_space<vmem>>, vector<6x1x20xf32>
    %45 = vector.extract_strided_slice %43 {offsets = [0, 0, 0], sizes = [6, 8, 16], strides = [1, 1, 1]} : vector<6x8x128xf32> to vector<6x8x16xf32>
    %cst_41 = arith.constant dense<0xFF800000> : vector<6x8xf32>
    %46 = vector.multi_reduction <maximumf>, %45, %cst_41 [2] : vector<6x8x16xf32> to vector<6x8xf32>
    %47 = vector.shape_cast %46 : vector<6x8xf32> to vector<6x8x1xf32>
    %48 = vector.broadcast %47 : vector<6x8x1xf32> to vector<6x8x20xf32>
    %49 = vector.broadcast %44 : vector<6x1x20xf32> to vector<6x8x20xf32>
    %50 = arith.addf %48, %49 : vector<6x8x20xf32>
    %cst_42 = arith.constant dense<0xFF800000> : vector<8x20xf32>
    %51 = vector.multi_reduction <maximumf>, %50, %cst_42 [0] : vector<6x8x20xf32> to vector<8x20xf32>
    %52 = vector.extract_strided_slice %43 {offsets = [0, 0, 16], sizes = [6, 8, 16], strides = [1, 1, 1]} : vector<6x8x128xf32> to vector<6x8x16xf32>
    %cst_43 = arith.constant dense<0xFF800000> : vector<6x8xf32>
    %53 = vector.multi_reduction <maximumf>, %52, %cst_43 [2] : vector<6x8x16xf32> to vector<6x8xf32>
    %54 = vector.shape_cast %53 : vector<6x8xf32> to vector<6x8x1xf32>
    %55 = vector.broadcast %54 : vector<6x8x1xf32> to vector<6x8x20xf32>
    %56 = vector.broadcast %44 : vector<6x1x20xf32> to vector<6x8x20xf32>
    %57 = arith.addf %55, %56 : vector<6x8x20xf32>
    %cst_44 = arith.constant dense<0xFF800000> : vector<8x20xf32>
    %58 = vector.multi_reduction <maximumf>, %57, %cst_44 [0] : vector<6x8x20xf32> to vector<8x20xf32>
    %59 = vector.extract_strided_slice %43 {offsets = [0, 0, 32], sizes = [6, 8, 16], strides = [1, 1, 1]} : vector<6x8x128xf32> to vector<6x8x16xf32>
    %cst_45 = arith.constant dense<0xFF800000> : vector<6x8xf32>
    %60 = vector.multi_reduction <maximumf>, %59, %cst_45 [2] : vector<6x8x16xf32> to vector<6x8xf32>
    %61 = vector.shape_cast %60 : vector<6x8xf32> to vector<6x8x1xf32>
    %62 = vector.broadcast %61 : vector<6x8x1xf32> to vector<6x8x20xf32>
    %63 = vector.broadcast %44 : vector<6x1x20xf32> to vector<6x8x20xf32>
    %64 = arith.addf %62, %63 : vector<6x8x20xf32>
    %cst_46 = arith.constant dense<0xFF800000> : vector<8x20xf32>
    %65 = vector.multi_reduction <maximumf>, %64, %cst_46 [0] : vector<6x8x20xf32> to vector<8x20xf32>
    %66 = vector.extract_strided_slice %43 {offsets = [0, 0, 48], sizes = [6, 8, 16], strides = [1, 1, 1]} : vector<6x8x128xf32> to vector<6x8x16xf32>
    %cst_47 = arith.constant dense<0xFF800000> : vector<6x8xf32>
    %67 = vector.multi_reduction <maximumf>, %66, %cst_47 [2] : vector<6x8x16xf32> to vector<6x8xf32>
    %68 = vector.shape_cast %67 : vector<6x8xf32> to vector<6x8x1xf32>
    %69 = vector.broadcast %68 : vector<6x8x1xf32> to vector<6x8x20xf32>
    %70 = vector.broadcast %44 : vector<6x1x20xf32> to vector<6x8x20xf32>
    %71 = arith.addf %69, %70 : vector<6x8x20xf32>
    %cst_48 = arith.constant dense<0xFF800000> : vector<8x20xf32>
    %72 = vector.multi_reduction <maximumf>, %71, %cst_48 [0] : vector<6x8x20xf32> to vector<8x20xf32>
    %73 = vector.extract_strided_slice %43 {offsets = [0, 0, 64], sizes = [6, 8, 16], strides = [1, 1, 1]} : vector<6x8x128xf32> to vector<6x8x16xf32>
    %cst_49 = arith.constant dense<0xFF800000> : vector<6x8xf32>
    %74 = vector.multi_reduction <maximumf>, %73, %cst_49 [2] : vector<6x8x16xf32> to vector<6x8xf32>
    %75 = vector.shape_cast %74 : vector<6x8xf32> to vector<6x8x1xf32>
    %76 = vector.broadcast %75 : vector<6x8x1xf32> to vector<6x8x20xf32>
    %77 = vector.broadcast %44 : vector<6x1x20xf32> to vector<6x8x20xf32>
    %78 = arith.addf %76, %77 : vector<6x8x20xf32>
    %cst_50 = arith.constant dense<0xFF800000> : vector<8x20xf32>
    %79 = vector.multi_reduction <maximumf>, %78, %cst_50 [0] : vector<6x8x20xf32> to vector<8x20xf32>
    %80 = vector.extract_strided_slice %43 {offsets = [0, 0, 80], sizes = [6, 8, 16], strides = [1, 1, 1]} : vector<6x8x128xf32> to vector<6x8x16xf32>
    %cst_51 = arith.constant dense<0xFF800000> : vector<6x8xf32>
    %81 = vector.multi_reduction <maximumf>, %80, %cst_51 [2] : vector<6x8x16xf32> to vector<6x8xf32>
    %82 = vector.shape_cast %81 : vector<6x8xf32> to vector<6x8x1xf32>
    %83 = vector.broadcast %82 : vector<6x8x1xf32> to vector<6x8x20xf32>
    %84 = vector.broadcast %44 : vector<6x1x20xf32> to vector<6x8x20xf32>
    %85 = arith.addf %83, %84 : vector<6x8x20xf32>
    %cst_52 = arith.constant dense<0xFF800000> : vector<8x20xf32>
    %86 = vector.multi_reduction <maximumf>, %85, %cst_52 [0] : vector<6x8x20xf32> to vector<8x20xf32>
    %87 = vector.extract_strided_slice %43 {offsets = [0, 0, 96], sizes = [6, 8, 16], strides = [1, 1, 1]} : vector<6x8x128xf32> to vector<6x8x16xf32>
    %cst_53 = arith.constant dense<0xFF800000> : vector<6x8xf32>
    %88 = vector.multi_reduction <maximumf>, %87, %cst_53 [2] : vector<6x8x16xf32> to vector<6x8xf32>
    %89 = vector.shape_cast %88 : vector<6x8xf32> to vector<6x8x1xf32>
    %90 = vector.broadcast %89 : vector<6x8x1xf32> to vector<6x8x20xf32>
    %91 = vector.broadcast %44 : vector<6x1x20xf32> to vector<6x8x20xf32>
    %92 = arith.addf %90, %91 : vector<6x8x20xf32>
    %cst_54 = arith.constant dense<0xFF800000> : vector<8x20xf32>
    %93 = vector.multi_reduction <maximumf>, %92, %cst_54 [0] : vector<6x8x20xf32> to vector<8x20xf32>
    %94 = vector.extract_strided_slice %43 {offsets = [0, 0, 112], sizes = [6, 8, 16], strides = [1, 1, 1]} : vector<6x8x128xf32> to vector<6x8x16xf32>
    %cst_55 = arith.constant dense<0xFF800000> : vector<6x8xf32>
    %95 = vector.multi_reduction <maximumf>, %94, %cst_55 [2] : vector<6x8x16xf32> to vector<6x8xf32>
    %96 = vector.shape_cast %95 : vector<6x8xf32> to vector<6x8x1xf32>
    %97 = vector.broadcast %96 : vector<6x8x1xf32> to vector<6x8x20xf32>
    %98 = vector.broadcast %44 : vector<6x1x20xf32> to vector<6x8x20xf32>
    %99 = arith.addf %97, %98 : vector<6x8x20xf32>
    %cst_56 = arith.constant dense<0xFF800000> : vector<8x20xf32>
    %100 = vector.multi_reduction <maximumf>, %99, %cst_56 [0] : vector<6x8x20xf32> to vector<8x20xf32>
    %101 = tpu.concatenate %51, %58, %65, %72, %79, %86, %93, %100 in 1 : vector<8x20xf32>, vector<8x20xf32>, vector<8x20xf32>, vector<8x20xf32>, vector<8x20xf32>, vector<8x20xf32>, vector<8x20xf32>, vector<8x20xf32> -> vector<8x160xf32>
    %c0_57 = arith.constant 0 : index
    %c0_58 = arith.constant 0 : index
    %102 = vector.load %arg6[%c0_57, %c0_58] : memref<160x16xf32, #tpu.memory_space<vmem>>, vector<160x16xf32>
    %cst_59 = arith.constant dense<0.000000e+00> : vector<8x16xf32>
    %103 = tpu.matmul %101, %102, %cst_59 {dimension_numbers = #tpu.dot_dimension_numbers<[1], [0], [0], [1], [0, 0, 1, 1], [], []>} : vector<8x160xf32>, vector<160x16xf32>, vector<8x16xf32> -> vector<8x16xf32>
    %c0_60 = arith.constant 0 : index
    %c0_61 = arith.constant 0 : index
    %104 = vector.load %arg7[%c0_60, %c0_61] : memref<1x16xf32, #tpu.memory_space<vmem>>, vector<1x16xf32>
    %105 = vector.broadcast %104 : vector<1x16xf32> to vector<8x16xf32>
    %106 = arith.addf %103, %105 : vector<8x16xf32>
    %c0_62 = arith.constant 0 : index
    %c0_63 = arith.constant 0 : index
    %107 = vector.load %arg9[%c0_62, %c0_63] : memref<8x16xf32, #tpu.memory_space<vmem>>, vector<8x16xf32>
    tpu.vector_store %arg9[%c0_62, %c0_63], %106 {strides = array<i32>} : memref<8x16xf32, #tpu.memory_space<vmem>>, vector<8x16xf32>,
    return
  }
  func.func @transform_0(%arg0: i32) -> (i32, i32, i32) {
    %c0_i32 = arith.constant 0 : i32
    %c0_i32_0 = arith.constant 0 : i32
    %c0_i32_1 = arith.constant 0 : i32
    return %arg0, %c0_i32, %c0_i32_0 : i32, i32, i32
  }
  func.func @transform_1(%arg0: i32) -> (i32, i32) {
    %c0_i32 = arith.constant 0 : i32
    %c0_i32_0 = arith.constant 0 : i32
    %c0_i32_1 = arith.constant 0 : i32
    return %c0_i32, %c0_i32_0 : i32, i32
  }
  func.func @transform_2(%arg0: i32) -> (i32, i32) {
    %c0_i32 = arith.constant 0 : i32
    %c0_i32_0 = arith.constant 0 : i32
    %c0_i32_1 = arith.constant 0 : i32
    return %c0_i32, %c0_i32_0 : i32, i32
  }
  func.func @transform_3(%arg0: i32) -> (i32, i32, i32) {
    %c0_i32 = arith.constant 0 : i32
    %c0_i32_0 = arith.constant 0 : i32
    %c0_i32_1 = arith.constant 0 : i32
    %c0_i32_2 = arith.constant 0 : i32
    return %c0_i32, %c0_i32_0, %c0_i32_1 : i32, i32, i32
  }
  func.func @transform_4(%arg0: i32) -> (i32, i32) {
    %c0_i32 = arith.constant 0 : i32
    %c0_i32_0 = arith.constant 0 : i32
    %c0_i32_1 = arith.constant 0 : i32
    return %c0_i32, %c0_i32_0 : i32, i32
  }
  func.func @transform_5(%arg0: i32) -> (i32, i32) {
    %c0_i32 = arith.constant 0 : i32
    %c0_i32_0 = arith.constant 0 : i32
    %c0_i32_1 = arith.constant 0 : i32
    return %c0_i32, %c0_i32_0 : i32, i32
  }
  func.func @transform_6(%arg0: i32) -> (i32, i32) {
    %c0_i32 = arith.constant 0 : i32
    %c0_i32_0 = arith.constant 0 : i32
    %c0_i32_1 = arith.constant 0 : i32
    return %c0_i32, %c0_i32_0 : i32, i32
  }
  func.func @transform_7(%arg0: i32) -> (i32, i32, i32) {
    %c0_i32 = arith.constant 0 : i32
    %c0_i32_0 = arith.constant 0 : i32
    %c0_i32_1 = arith.constant 0 : i32
    %c0_i32_2 = arith.constant 0 : i32
    return %c0_i32, %c0_i32_0, %c0_i32_1 : i32, i32, i32
  }
  func.func @transform_8(%arg0: i32) -> (i32, i32) {
    %c0_i32 = arith.constant 0 : i32
    %c0_i32_0 = arith.constant 0 : i32
    return %arg0, %c0_i32 : i32, i32
  }
}

</mosaic_0001>

<bundles_post_ra>
// kernel: encoder_forward.1
= control target key start
LH: loop header
LB: loop body
LE: loop exit
PB: predicated region body
PF: predicated region fallthrough
CT: control target
= control target key end

     0   :  { %s2488_s27 = smov 0   ;;  %s3245_s0 = inlined_call_operand.vmem [shape: f32[2,168,112], index: 0, kind: input, shape index: {}]   ;;  %s3246_s1 = inlined_call_operand.vmem [shape: f32[112,64], index: 1, kind: input, shape index: {}]   ;;  %s3247_s2 = inlined_call_operand.vmem [shape: f32[1,64], index: 2, kind: input, shape index: {}]   ;;  %s3248_s3 = inlined_call_operand.vmem [shape: f32[5,64,128], index: 3, kind: input, shape index: {}]   ;;  %s3249_s4 = inlined_call_operand.vmem [shape: f32[1,128], index: 4, kind: input, shape index: {}]   ;;  %s3250_s5 = inlined_call_operand.vmem [shape: f32[160,16], index: 5, kind: input, shape index: {}]   ;;  %s3251_s6 = inlined_call_operand.vmem [shape: f32[1,16], index: 6, kind: input, shape index: {}]   ;;  %s3252_s7 = inlined_call_operand.vmem [shape: f32[6,1,20], index: 7, kind: input, shape index: {}]   ;;  %s3253_s8 = inlined_call_operand.vmem [shape: f32[16,16], index: 8, kind: output, shape index: {}]  }
   0x1 LB: > { %s1827_s28 = sadd.s32 4294967295, %s2431_s27   ;;  %p1831_p0 = scmp.ge.s32.totalorder %s2431_s27, 1  ;;  %s2431_s27 = sphi %s2488_s27, %s18_s27  }
   0x2   : > { %p262_p1 = scmp.lt.s32.totalorder %s2431_s27, 3 }
   0x4   : > { %p263_p2 = pnand %p1831_p0, %p262_p1 }
   0x5   : > { %v325_v0 = vld [vmem:[%s3246_s1] sm:$0xff] (!%p263_p2)  ;;  %v326_v1 = vld [vmem:[%s3246_s1 + $0x8] sm:$0xff] (!%p263_p2)  ;;  %v327_v2 = vld [vmem:[%s3246_s1 + $0x10] sm:$0xff] (!%p263_p2)  ;;  %v2433_v3 = vmov (!%p263_p2), 0.0|0.0   ;;  %vm2434_vm0 = vmmov (!%p263_p2), 0   ;;  %v2435_v6 = vmov (!%p263_p2), 0.0  }
   0x6   : > { %266 = sbr.rel (%p263_p2) target bundleno = 1139 (0x473), region = 52  ;;  %2250 = vmatprep.subr.bf16.mxu0 (!%p263_p2), %v2433_v3  ;;  %v2251_v4 = vpack.c.bf16 (!%p263_p2), %v326_v1, %v325_v0  ;;  %v328_v5 = vld [vmem:[%s3246_s1 + $0x18] sm:$0xff] (!%p263_p2)  ;;  %2062 = vmatprep.mubr.msk.f32.mxu0 (!%p263_p2), %vm2434_vm0, %v2435_v6  ;;  %v329_v8 = vld [vmem:[%s3246_s1 + $0x20] sm:$0xff] (!%p263_p2)  ;;  %v330_v9 = vld [vmem:[%s3246_s1 + $0x28] sm:$0xff] (!%p263_p2)  ;;  %p295_p3 = scmp.lt.s32.totalorder (!%p263_p2), %s1827_s28, 1  ;;  %vm346_vm1 = vcmask (!%p263_p2), 916480  }
   0x7   : > { %v2254_v7 = vpack.c.bf16 (!%p263_p2), %v328_v5, %v327_v2  ;;  %v2257_v10 = vpack.c.bf16 (!%p263_p2), %v330_v9, %v329_v8  ;;  %v331_v11 = vld [vmem:[%s3246_s1 + $0x30] sm:$0xff] (!%p263_p2)  ;;  %v332_v12 = vld [vmem:[%s3246_s1 + $0x38] sm:$0xff] (!%p263_p2)  ;;  %v333_v14 = vld [vmem:[%s3246_s1 + $0x40] sm:$0xff] (!%p263_p2)  ;;  %vm601_vm2 = vcmask (!%p263_p2), 523264   ;;  %vm1415_vm3 = vcmask (!%p263_p2), 392448   ;;  %s2436_s17 = smov (!%p263_p2), 40  }
   0x8   : > { %2252 = vmatpush3.bf16.msra.mxu0 (!%p263_p2), %v2251_v4  ;;  %v2260_v13 = vpack.c.bf16 (!%p263_p2), %v332_v12, %v331_v11  ;;  %v334_v15 = vld [vmem:[%s3246_s1 + $0x48] sm:$0xff] (!%p263_p2)  ;;  %v335_v17 = vld [vmem:[%s3246_s1 + $0x50] sm:$0xff] (!%p263_p2)  ;;  %v336_v18 = vld [vmem:[%s3246_s1 + $0x58] sm:$0xff] (!%p263_p2)  ;;  %vm1379_vm4 = vcmask (!%p263_p2), 261248   ;;  %vm1451_vm5 = vcmask (!%p263_p2), 523648   ;;  %vm1487_vm6 = vcmask (!%p263_p2), 654848  }
   0x9   : > { %2253 = vmatprep.subr.bf16.mxu0 (!%p263_p2), %v2433_v3  ;;  %v2263_v16 = vpack.c.bf16 (!%p263_p2), %v334_v15, %v333_v14  ;;  %v2266_v19 = vpack.c.bf16 (!%p263_p2), %v336_v18, %v335_v17  ;;  %v337_v20 = vld [vmem:[%s3246_s1 + $0x60] sm:$0xff] (!%p263_p2)  ;;  %v338_v21 = vld [vmem:[%s3246_s1 + $0x68] sm:$0xff] (!%p263_p2)  ;;  %v1858_v46 = vld [vmem:[%s3248_s3 + $0x50] sm:$0xff] (!%p263_p2)  ;;  %vm1523_vm7 = vcmask (!%p263_p2), 786048   ;;  %vm1559_vm8 = vcmask (!%p263_p2), 917248   ;;  %s2437_s19 = smov (!%p263_p2), 60  }
   0xa   : > { %v2269_v22 = vpack.c.bf16 (!%p263_p2), %v338_v21, %v337_v20  ;;  %v1856_v43 = vld [vmem:[%s3248_s3 + $0x40] sm:$0xff] (!%p263_p2)  ;;  %v1857_v44 = vld [vmem:[%s3248_s3 + $0x48] sm:$0xff] (!%p263_p2)  ;;  %v1859_v47 = vld [vmem:[%s3248_s3 + $0x58] sm:$0xff] (!%p263_p2)  ;;  %vm1595_vm9 = vcmask (!%p263_p2), 1048448   ;;  %vm1306_vm10 = vcmask (!%p263_p2), 130048   ;;  %vm1367_vm11 = vcmask (!%p263_p2), 162816  }
   0xb   : > { %v2271_v45 = vpack.c.bf16 (!%p263_p2), %v1857_v44, %v1856_v43  ;;  %v2275_v48 = vpack.c.bf16 (!%p263_p2), %v1859_v47, %v1858_v46  ;;  %v1860_v49 = vld [vmem:[%s3248_s3 + $0x60] sm:$0xff] (!%p263_p2)  ;;  %v1861_v50 = vld [vmem:[%s3248_s3 + $0x68] sm:$0xff] (!%p263_p2)  ;;  %v1862_v52 = vld [vmem:[%s3248_s3 + $0x70] sm:$0xff] (!%p263_p2)  ;;  %s2438_s24 = smov (!%p263_p2), 80   ;;  %s2440_s25 = smov (!%p263_p2), 120   ;;  %vm1660_vm12 = vcmask (!%p263_p2), 326656  }
   0xc   : > { %2255 = vmatpush3.bf16.msra.mxu0 (!%p263_p2), %v2254_v7  ;;  %v2279_v51 = vpack.c.bf16 (!%p263_p2), %v1861_v50, %v1860_v49  ;;  %v1863_v53 = vld [vmem:[%s3248_s3 + $0x78] sm:$0xff] (!%p263_p2)  ;;  %v630_v55 = vld [vmem:[%s3248_s3] sm:$0xff] (!%p263_p2)  ;;  %v631_v56 = vld [vmem:[%s3248_s3 + $0x8] sm:$0xff] (!%p263_p2)  ;;  %s2441_s26 = smov (!%p263_p2), 100   ;;  %s2442_s29 = smov (!%p263_p2), 12   ;;  %vm1662_vm13 = vcmask (!%p263_p2), 490496  }
   0xd   : > { %2256 = vmatprep.subr.bf16.mxu0 %v2433_v3  ;;  %s3255_s28 = smov (!%p295_p3, %s1827_s28), 1  ;;  %2272 = vmatprep.subr.bf16.mxu1 %v2271_v45  ;;  %v2283_v54 = vpack.c.bf16 %v1863_v53, %v1862_v52  ;;  %v2670_v57 = vpack.c.bf16 %v631_v56, %v630_v55  ;;  %v2676_v58 = vld [vmem:[%s3247_s2] ss:$0 sm:$0xff]  ;;  %v635_v47 = vld [vmem:[%s3248_s3 + $0x28] sm:$0xff]  ;;  %v637_v55 = vld [vmem:[%s3248_s3 + $0x38] sm:$0xff]  ;;  %vm1664_vm14 = vcmask 654336  }
   0xe   : > { %s2405_s15 = smul.u32 168, %s3255_s28  ;;  %2274 = vmatpush3.bf16.msra.mxu1 %v2271_v45  ;;  %v634_v46 = vld [vmem:[%s3248_s3 + $0x20] sm:$0xff]  ;;  %vm1666_vm15 = vcmask 818176   ;;  %s1833_s30 = sshll.u32 %s3255_s28, 3 }
   0xf   : > { %2276 = vmatprep.subr.bf16.mxu1 %v2275_v48  ;;  %s303_s13 = scalar_lea.vmem %s3253_s8, %s1833_s30 }
  0x10   : > { %2258 = vmatpush3.bf16.msra.mxu0 %v2257_v10  ;;  %s2557_s18 = scalar_lea.vmem %s3245_s0, %s2405_s15 }
  0x11   : > { %2259 = vmatprep.subr.bf16.mxu0 %v2433_v3  ;;  %v304_v23 = vld [vmem:[%s2557_s18] sm:$0xff]  ;;  %v305_v24 = vld [vmem:[%s2557_s18 + $0x8] sm:$0xff]  ;;  %v306_v25 = vld [vmem:[%s2557_s18 + $0x10] sm:$0xff] }
  0x12   : > { %v307_v26 = vld [vmem:[%s2557_s18 + $0x18] sm:$0xff]  ;;  %v308_v27 = vld [vmem:[%s2557_s18 + $0x20] sm:$0xff]  ;;  %v309_v28 = vld [vmem:[%s2557_s18 + $0x28] sm:$0xff]  ;;  %2278 = vmatpush3.bf16.msra.mxu1 %v2275_v48 }
  0x13   : > { %v310_v29 = vld [vmem:[%s2557_s18 + $0x30] sm:$0xff]  ;;  %v311_v30 = vld [vmem:[%s2557_s18 + $0x38] sm:$0xff]  ;;  %v312_v31 = vld [vmem:[%s2557_s18 + $0x40] sm:$0xff]  ;;  %2280 = vmatprep.subr.bf16.mxu1 %v2279_v51 }
  0x14   : > { %2261 = vmatpush3.bf16.msra.mxu0 %v2260_v13  ;;  %v313_v32 = vld [vmem:[%s2557_s18 + $0x48] sm:$0xff]  ;;  %v314_v33 = vld [vmem:[%s2557_s18 + $0x50] sm:$0xff]  ;;  %v315_v34 = vld [vmem:[%s2557_s18 + $0x58] sm:$0xff] }
  0x15   : > { %2262 = vmatprep.subr.bf16.mxu0 %v2433_v3  ;;  %v316_v35 = vld [vmem:[%s2557_s18 + $0x60] sm:$0xff]  ;;  %v317_v36 = vld [vmem:[%s2557_s18 + $0x68] sm:$0xff]  ;;  %v318_v37 = vld [vmem:[%s2557_s18 + $0x70] sm:$0xff] }
  0x16   : > { %v319_v38 = vld [vmem:[%s2557_s18 + $0x78] sm:$0xff]  ;;  %v320_v39 = vld [vmem:[%s2557_s18 + $0x80] sm:$0xff]  ;;  %v321_v40 = vld [vmem:[%s2557_s18 + $0x88] sm:$0xff]  ;;  %2282 = vmatpush3.bf16.msra.mxu1 %v2279_v51  ;;  %v2295_v51 = vpack.c.bf16 %v635_v47, %v634_v46 }
  0x17   : > { %v322_v41 = vld [vmem:[%s2557_s18 + $0x90] sm:$0xff]  ;;  %v323_v42 = vld [vmem:[%s2557_s18 + $0x98] sm:$0xff]  ;;  %2284 = vmatprep.subr.bf16.mxu1 %v2283_v54 }
  0x18   : > { %2264 = vmatpush3.bf16.msra.mxu0 %v2263_v16 }
  0x19   : > { %2265 = vmatprep.subr.bf16.mxu0 %v2433_v3 }
  0x1a   : > { %2286 = vmatpush3.bf16.msra.mxu1 %v2283_v54  ;;  %v636_v54 = vld [vmem:[%s3248_s3 + $0x30] sm:$0xff] }
  0x1b   : > { %2288 = vmatprep.subr.bf16.mxu1 %v2670_v57 }
  0x1c   : > { %2267 = vmatpush3.bf16.msra.mxu0 %v2266_v19 }
  0x1d   : > { %2268 = vmatprep.subr.bf16.mxu0 %v2433_v3 }
  0x20   : > { %2270 = vmatpush3.bf16.msra.mxu0 %v2269_v22 }
  0x21   : > { %2351 = vmatprep.subr.bf16.mxu0 %v2433_v3 }
  0x23   : > { %2063 = vmatmul.mubr.msk.f32.vlgmr.msra.gmra.mrb[0].mxu0 %vm346_vm1, %v304_v23 }
  0x24   : > { %2065 = vmatprep.mubr.msk.f32.mxu0 %vm2434_vm0, %v2435_v6 }
  0x27   : > { %2066 = vmatmul.mubr.msk.f32.gmra.mrb[2].mxu0 %vm346_vm1, %v305_v24 }
  0x28   : > { %2068 = vmatprep.mubr.msk.f32.mxu0 %vm2434_vm0, %v2435_v6 }
  0x2b   : > { %2069 = vmatmul.mubr.msk.f32.gmra.mrb[4].mxu0 %vm346_vm1, %v306_v25 }
  0x2c   : > { %2071 = vmatprep.mubr.msk.f32.mxu0 %vm2434_vm0, %v2435_v6 }
  0x2f   : > { %2072 = vmatmul.mubr.msk.f32.gmra.mrb[6].mxu0 %vm346_vm1, %v307_v26 }
  0x30   : > { %2074 = vmatprep.mubr.msk.f32.mxu0 %vm2434_vm0, %v2435_v6 }
  0x33   : > { %2075 = vmatmul.mubr.msk.f32.gmra.mrb[8].mxu0 %vm346_vm1, %v308_v27 }
  0x34   : > { %2077 = vmatprep.mubr.msk.f32.mxu0 %vm2434_vm0, %v2435_v6 }
  0x37   : > { %2078 = vmatmul.mubr.msk.f32.gmra.mrb[10].mxu0 %vm346_vm1, %v309_v28 }
  0x38   : > { %2080 = vmatprep.mubr.msk.f32.mxu0 %vm2434_vm0, %v2435_v6 }
  0x3b   : > { %2081 = vmatmul.mubr.msk.f32.gmra.mrb[12].mxu0 %vm346_vm1, %v310_v29 }
  0x3c   : > { %2083 = vmatprep.mubr.msk.f32.mxu0 %vm2434_vm0, %v2435_v6 }
  0x3f   : > { %2084 = vmatmul.mubr.msk.f32.gmra.mrb[14].mxu0 %vm346_vm1, %v311_v30 }
  0x40   : > { %2086 = vmatprep.mubr.msk.f32.mxu0 %vm2434_vm0, %v2435_v6 }
  0x43   : > { %2087 = vmatmul.mubr.msk.f32.gmra.mrb[16].mxu0 %vm346_vm1, %v312_v31 }
  0x44   : > { %2089 = vmatprep.mubr.msk.f32.mxu0 %vm2434_vm0, %v2435_v6 }
  0x47   : > { %2090 = vmatmul.mubr.msk.f32.gmra.mrb[18].mxu0 %vm346_vm1, %v313_v32 }
  0x48   : > { %2092 = vmatprep.mubr.msk.f32.mxu0 %vm2434_vm0, %v2435_v6 }
  0x4b   : > { %2093 = vmatmul.mubr.msk.f32.gmra.mrb[20].mxu0 %vm346_vm1, %v314_v33 }
  0x4c   : > { %2095 = vmatprep.mubr.msk.f32.mxu0 %vm2434_vm0, %v2435_v6 }
  0x4f   : > { %2096 = vmatmul.mubr.msk.f32.gmra.mrb[22].mxu0 %vm346_vm1, %v315_v34 }
  0x50   : > { %2098 = vmatprep.mubr.msk.f32.mxu0 %vm2434_vm0, %v2435_v6 }
  0x53   : > { %2099 = vmatmul.mubr.msk.f32.gmra.mrb[24].mxu0 %vm346_vm1, %v316_v35 }
  0x54   : > { %2101 = vmatprep.mubr.msk.f32.mxu0 %vm2434_vm0, %v2435_v6 }
  0x57   : > { %2102 = vmatmul.mubr.msk.f32.gmra.mrb[26].mxu0 %vm346_vm1, %v317_v36 }
  0x58   : > { %2104 = vmatprep.mubr.msk.f32.mxu0 %vm2434_vm0, %v2435_v6 }
  0x5b   : > { %2105 = vmatmul.mubr.msk.f32.gmra.mrb[28].mxu0 %vm346_vm1, %v318_v37 }
  0x5c   : > { %2107 = vmatprep.mubr.msk.f32.mxu0 %vm2434_vm0, %v2435_v6 }
  0x5f   : > { %2108 = vmatmul.mubr.msk.f32.gmra.mrb[30].mxu0 %vm346_vm1, %v319_v38  ;;  %v632_v38 = vld [vmem:[%s3248_s3 + $0x10] sm:$0xff] }
  0x60   : > { %2110 = vmatprep.mubr.msk.f32.mxu0 %vm2434_vm0, %v2435_v6 }
  0x63   : > { %2111 = vmatmul.mubr.msk.f32.gmra.mrb[32].mxu0 %vm346_vm1, %v320_v39  ;;  %v633_v39 = vld [vmem:[%s3248_s3 + $0x18] sm:$0xff] }
  0x64   : > { %2113 = vmatprep.mubr.msk.f32.mxu0 %vm2434_vm0, %v2435_v6  ;;  %v2291_v43 = vpack.c.bf16 %v633_v39, %v632_v38 }
  0x67   : > { %2114 = vmatmul.mubr.msk.f32.gmra.mrb[34].mxu0 %vm346_vm1, %v321_v40 }
  0x68   : > { %2116 = vmatprep.mubr.msk.f32.mxu0 %vm2434_vm0, %v2435_v6 }
  0x6b   : > { %2117 = vmatmul.mubr.msk.f32.gmra.mrb[36].mxu0 %vm346_vm1, %v322_v41 }
  0x6c   : > { %2119 = vmatprep.mubr.msk.f32.mxu0 %vm2434_vm0, %v2435_v6 }
  0x6f   : > { %2120 = vmatmul.mubr.msk.f32.gmra.mrb[38].mxu0 %vm346_vm1, %v323_v42 }
  0x70   : > { %2122 = vmatprep.mubr.msk.f32.mxu0 %vm2434_vm0, %v2435_v6  ;;  %vm1670_vm0 = vcmask 97280  }
  0xf6   : > { %v476_v59 = vpop.f32.mrb[0].mxu0 }
  0xf7   : > { %v477_v60 = vadd.f32 %v2676_v58, %v476_v59  ;;  %v2064_v61 = vpop.f32.mrb[1].mxu0 }
  0xf9   : > { %v580_v62 = vmax.f32 %v477_v60, 0.0  ;;  %v2299_v60 = vpack.c.bf16 %v637_v55, %v636_v54 }
  0xfa   : > { %v481_v63 = vpop.f32.mrb[2].mxu0 }
  0xfb   : > { %602 = vst.msk [vmem:[#allocation2] sm:$0xff] %vm601_vm2, %v580_v62  ;;  %v482_v0 = vadd.f32 %v2676_v58, %v481_v63  ;;  %v2067_v1 = vpop.f32.mrb[3].mxu0  ;;  %v1876_v63 = vld [vmem:[%s3248_s3 + $0x80] sm:$0xff] }
  0xfc   : > { %623 = vst.msk [vmem:[#allocation2] sm:$0xff] %vm601_vm2, %v2435_v6 }
  0xfd   : > { %v581_v2 = vmax.f32 %v482_v0, 0.0  ;;  %v1877_v0 = vld [vmem:[%s3248_s3 + $0x88] sm:$0xff] }
  0xfe   : > { %v486_v4 = vpop.f32.mrb[4].mxu0 }
  0xff   : > { %603 = vst.msk [vmem:[#allocation2 + $0x8] sm:$0xff] %vm601_vm2, %v581_v2  ;;  %v487_v5 = vadd.f32 %v2676_v58, %v486_v4  ;;  %v2070_v7 = vpop.f32.mrb[5].mxu0 }
 0x101   : > { %v582_v8 = vmax.f32 %v487_v5, 0.0  ;;  %v2303_v5 = vpack.c.bf16 %v1877_v0, %v1876_v63  ;;  %v1896_v0 = vld [vmem:[%s3248_s3 + $0xf0] sm:$0xff] }
 0x102   : > { %v491_v9 = vpop.f32.mrb[6].mxu0 }
 0x103   : > { %604 = vst.msk [vmem:[#allocation2 + $0x10] sm:$0xff] %vm601_vm2, %v582_v8  ;;  %v492_v10 = vadd.f32 %v2676_v58, %v491_v9  ;;  %v2073_v11 = vpop.f32.mrb[7].mxu0 }
 0x105   : > { %v583_v12 = vmax.f32 %v492_v10, 0.0 }
 0x106   : > { %v496_v13 = vpop.f32.mrb[8].mxu0 }
 0x107   : > { %605 = vst.msk [vmem:[#allocation2 + $0x18] sm:$0xff] %vm601_vm2, %v583_v12  ;;  %v497_v6 = vadd.f32 %v2676_v58, %v496_v13  ;;  %v2076_v14 = vpop.f32.mrb[9].mxu0  ;;  %v624_v12 = vld [vmem:[#allocation2] sm:$0xff] }
 0x108   : > { %v1878_v14 = vld [vmem:[%s3248_s3 + $0x90] sm:$0xff] }
 0x109   : > { %v584_v15 = vmax.f32 %v497_v6, 0.0 }
 0x10a   : > { %v501_v16 = vpop.f32.mrb[10].mxu0 }
 0x10b   : > { %606 = vst.msk [vmem:[#allocation2 + $0x20] sm:$0xff] %vm601_vm2, %v584_v15  ;;  %v502_v17 = vadd.f32 %v2676_v58, %v501_v16  ;;  %v2079_v18 = vpop.f32.mrb[11].mxu0  ;;  %v1879_v15 = vld [vmem:[%s3248_s3 + $0x98] sm:$0xff] }
 0x10d   : > { %v585_v19 = vmax.f32 %v502_v17, 0.0 }
 0x10e   : > { %v506_v20 = vpop.f32.mrb[12].mxu0 }
 0x10f   : > { %607 = vst.msk [vmem:[#allocation2 + $0x28] sm:$0xff] %vm601_vm2, %v585_v19  ;;  %v507_v21 = vadd.f32 %v2676_v58, %v506_v20  ;;  %v2082_v22 = vpop.f32.mrb[13].mxu0  ;;  %v2307_v19 = vpack.c.bf16 %v1879_v15, %v1878_v14  ;;  %v2764_v20 = vld [vmem:[#allocation2 + $0x8] sm:$0xff] }
 0x110   : > { %v1880_v22 = vld [vmem:[%s3248_s3 + $0xa0] sm:$0xff]  ;;  %v1909_v14 = vld [vmem:[%s3248_s3 + $0x128] sm:$0xff] }
 0x111   : > { %v586_v23 = vmax.f32 %v507_v21, 0.0 }
 0x112   : > { %v511_v24 = vpop.f32.mrb[14].mxu0 }
 0x113   : > { %608 = vst.msk [vmem:[#allocation2 + $0x30] sm:$0xff] %vm601_vm2, %v586_v23  ;;  %v512_v25 = vadd.f32 %v2676_v58, %v511_v24  ;;  %v2085_v26 = vpop.f32.mrb[15].mxu0  ;;  %v1881_v23 = vld [vmem:[%s3248_s3 + $0xa8] sm:$0xff]  ;;  %v2775_v24 = vld [vmem:[#allocation2 + $0x10] sm:$0xff] }
 0x115   : > { %v587_v27 = vmax.f32 %v512_v25, 0.0 }
 0x116   : > { %v516_v28 = vpop.f32.mrb[16].mxu0  ;;  %v2796_v39 = vld [vmem:[#allocation2 + $0x28] sm:$0xff] }
 0x117   : > { %609 = vst.msk [vmem:[#allocation2 + $0x38] sm:$0xff] %vm601_vm2, %v587_v27  ;;  %v517_v29 = vadd.f32 %v2676_v58, %v516_v28  ;;  %v2088_v30 = vpop.f32.mrb[17].mxu0  ;;  %v2311_v28 = vpack.c.bf16 %v1881_v23, %v1880_v22 }
 0x119   : > { %v588_v31 = vmax.f32 %v517_v29, 0.0  ;;  %v2780_v29 = vld [vmem:[#allocation2 + $0x18] sm:$0xff] }
 0x11a   : > { %v521_v32 = vpop.f32.mrb[18].mxu0 }
 0x11b   : > { %610 = vst.msk [vmem:[#allocation2 + $0x40] sm:$0xff] %vm601_vm2, %v588_v31  ;;  %v522_v33 = vadd.f32 %v2676_v58, %v521_v32  ;;  %v2091_v34 = vpop.f32.mrb[19].mxu0  ;;  %v1882_v31 = vld [vmem:[%s3248_s3 + $0xb0] sm:$0xff]  ;;  %v1883_v32 = vld [vmem:[%s3248_s3 + $0xb8] sm:$0xff] }
 0x11c   : > { %v2315_v38 = vpack.c.bf16 %v1883_v32, %v1882_v31 }
 0x11d   : > { %v589_v35 = vmax.f32 %v522_v33, 0.0  ;;  %v2791_v33 = vld [vmem:[#allocation2 + $0x20] sm:$0xff] }
 0x11e   : > { %v526_v36 = vpop.f32.mrb[20].mxu0  ;;  %v638_v37 = vld [vmem:[#allocation2 + $0x38] sm:$0xff] }
 0x11f   : > { %611 = vst.msk [vmem:[#allocation2 + $0x48] sm:$0xff] %vm601_vm2, %v589_v35  ;;  %v527_v40 = vadd.f32 %v2676_v58, %v526_v36  ;;  %v2094_v41 = vpop.f32.mrb[21].mxu0  ;;  %2141 = vmatprep.mubr.msk.f32.mxu1 %vm601_vm2, %v638_v37 }
 0x120   : > { %v1890_v41 = vld [vmem:[%s3248_s3 + $0xc0] sm:$0xff] }
 0x121   : > { %v590_v42 = vmax.f32 %v527_v40, 0.0 }
 0x122   : > { %v531_v44 = vpop.f32.mrb[22].mxu0  ;;  %v2708_v45 = vld [vmem:[#allocation2 + $0x40] sm:$0xff] }
 0x123   : > { %612 = vst.msk [vmem:[#allocation2 + $0x50] sm:$0xff] %vm601_vm2, %v590_v42  ;;  %v532_v48 = vadd.f32 %v2676_v58, %v531_v44  ;;  %v2097_v49 = vpop.f32.mrb[23].mxu0  ;;  %2142 = vmatmul.mubr.msk.f32.vlgmr.msra.gmra.mrb[0].mxu1 %vm601_vm2, %v2708_v45  ;;  %v1891_v42 = vld [vmem:[%s3248_s3 + $0xc8] sm:$0xff] }
 0x124   : > { %2290 = vmatpush3.bf16.msra.mxu1 %v2670_v57  ;;  %v2319_v47 = vpack.c.bf16 %v1891_v42, %v1890_v41  ;;  %v1892_v49 = vld [vmem:[%s3248_s3 + $0xd0] sm:$0xff] }
 0x125   : > { %v591_v50 = vmax.f32 %v532_v48, 0.0  ;;  %2292 = vmatprep.subr.bf16.mxu1 %v2291_v43 }
 0x126   : > { %v536_v52 = vpop.f32.mrb[24].mxu0  ;;  %v2721_v53 = vld [vmem:[#allocation2 + $0x48] sm:$0xff] }
 0x127   : > { %613 = vst.msk [vmem:[#allocation2 + $0x58] sm:$0xff] %vm601_vm2, %v591_v50  ;;  %v537_v56 = vadd.f32 %v2676_v58, %v536_v52  ;;  %v2100_v59 = vpop.f32.mrb[25].mxu0  ;;  %2144 = vmatprep.mubr.msk.f32.mxu1 %vm601_vm2, %v2721_v53  ;;  %v1893_v50 = vld [vmem:[%s3248_s3 + $0xd8] sm:$0xff] }
 0x128   : > { %2294 = vmatpush3.bf16.msra.mxu1 %v2291_v43 }
 0x129   : > { %v592_v57 = vmax.f32 %v537_v56, 0.0  ;;  %2296 = vmatprep.subr.bf16.mxu1 %v2295_v51  ;;  %v2323_v56 = vpack.c.bf16 %v1893_v50, %v1892_v49 }
 0x12a   : > { %v2733_v61 = vld [vmem:[#allocation2 + $0x50] sm:$0xff]  ;;  %v541_v62 = vpop.f32.mrb[26].mxu0 }
 0x12b   : > { %614 = vst.msk [vmem:[#allocation2 + $0x60] sm:$0xff] %vm601_vm2, %v592_v57  ;;  %2145 = vmatmul.mubr.msk.f32.gmra.mrb[2].mxu1 %vm601_vm2, %v2733_v61  ;;  %v542_v1 = vadd.f32 %v2676_v58, %v541_v62  ;;  %v2103_v2 = vpop.f32.mrb[27].mxu0  ;;  %v1894_v57 = vld [vmem:[%s3248_s3 + $0xe0] sm:$0xff] }
 0x12c   : > { %2298 = vmatpush3.bf16.msra.mxu1 %v2295_v51 }
 0x12d   : > { %v593_v4 = vmax.f32 %v542_v1, 0.0  ;;  %2300 = vmatprep.subr.bf16.mxu1 %v2299_v60  ;;  %v1897_v1 = vld [vmem:[%s3248_s3 + $0xf8] sm:$0xff] }
 0x12e   : > { %v2745_v7 = vld [vmem:[#allocation2 + $0x58] sm:$0xff]  ;;  %v546_v8 = vpop.f32.mrb[28].mxu0  ;;  %v2331_v2 = vpack.c.bf16 %v1897_v1, %v1896_v0 }
 0x12f   : > { %615 = vst.msk [vmem:[#allocation2 + $0x68] sm:$0xff] %vm601_vm2, %v593_v4  ;;  %2147 = vmatprep.mubr.msk.f32.mxu1 %vm601_vm2, %v2745_v7  ;;  %v547_v9 = vadd.f32 %v2676_v58, %v546_v8  ;;  %v2106_v10 = vpop.f32.mrb[29].mxu0  ;;  %v1905_v8 = vld [vmem:[%s3248_s3 + $0x108] sm:$0xff] }
 0x130   : > { %2302 = vmatpush3.bf16.msra.mxu1 %v2299_v60  ;;  %v1895_v60 = vld [vmem:[%s3248_s3 + $0xe8] sm:$0xff]  ;;  %v1906_v10 = vld [vmem:[%s3248_s3 + $0x110] sm:$0xff] }
 0x131   : > { %v594_v11 = vmax.f32 %v547_v9, 0.0  ;;  %2304 = vmatprep.subr.bf16.mxu1 %v2303_v5  ;;  %v2327_v62 = vpack.c.bf16 %v1895_v60, %v1894_v57 }
 0x132   : > { %v2751_v13 = vld [vmem:[#allocation2 + $0x60] sm:$0xff]  ;;  %v551_v6 = vpop.f32.mrb[30].mxu0 }
 0x133   : > { %616 = vst.msk [vmem:[#allocation2 + $0x70] sm:$0xff] %vm601_vm2, %v594_v11  ;;  %2148 = vmatmul.mubr.msk.f32.gmra.mrb[4].mxu1 %vm601_vm2, %v2751_v13  ;;  %v552_v16 = vadd.f32 %v2676_v58, %v551_v6  ;;  %v2109_v17 = vpop.f32.mrb[31].mxu0  ;;  %v1907_v11 = vld [vmem:[%s3248_s3 + $0x118] sm:$0xff]  ;;  %v1908_v6 = vld [vmem:[%s3248_s3 + $0x120] sm:$0xff] }
 0x134   : > { %2166 = vmatprep.mubr.msk.f32.mxu1 %vm601_vm2, %v624_v12  ;;  %v2339_v12 = vpack.c.bf16 %v1907_v11, %v1906_v10  ;;  %v2343_v15 = vpack.c.bf16 %v1909_v14, %v1908_v6  ;;  %v1911_v17 = vld [vmem:[%s3248_s3 + $0x138] sm:$0xff] }
 0x135   : > { %v595_v18 = vmax.f32 %v552_v16, 0.0  ;;  %v1910_v16 = vld [vmem:[%s3248_s3 + $0x130] sm:$0xff] }
 0x136   : > { %v556_v21 = vpop.f32.mrb[32].mxu0 }
 0x137   : > { %617 = vst.msk [vmem:[#allocation2 + $0x78] sm:$0xff] %vm601_vm2, %v595_v18  ;;  %2167 = vmatmul.mubr.msk.f32.vlgmr.msra.gmra.mrb[0].mxu1 %vm601_vm2, %v2764_v20  ;;  %v557_v25 = vadd.f32 %v2676_v58, %v556_v21  ;;  %v2112_v26 = vpop.f32.mrb[33].mxu0  ;;  %v2347_v18 = vpack.c.bf16 %v1911_v17, %v1910_v16 }
 0x138   : > { %2306 = vmatpush3.bf16.msra.mxu1 %v2303_v5  ;;  %2169 = vmatprep.mubr.msk.f32.mxu1 %vm601_vm2, %v2775_v24  ;;  %v1904_v5 = vld [vmem:[%s3248_s3 + $0x100] sm:$0xff] }
 0x139   : > { %v596_v27 = vmax.f32 %v557_v25, 0.0  ;;  %2308 = vmatprep.subr.bf16.mxu1 %v2307_v19  ;;  %v2335_v9 = vpack.c.bf16 %v1905_v8, %v1904_v5 }
 0x13a   : > { %v561_v30 = vpop.f32.mrb[34].mxu0  ;;  %v879_v37 = vld [vmem:[#allocation2 + $0x70] sm:$0xff] }
 0x13b   : > { %618 = vst.msk [vmem:[#allocation2 + $0x80] sm:$0xff] %vm601_vm2, %v596_v27  ;;  %2170 = vmatmul.mubr.msk.f32.gmra.mrb[2].mxu1 %vm601_vm2, %v2780_v29  ;;  %v562_v34 = vadd.f32 %v2676_v58, %v561_v30  ;;  %v2115_v35 = vpop.f32.mrb[35].mxu0 }
 0x13c   : > { %2310 = vmatpush3.bf16.msra.mxu1 %v2307_v19  ;;  %2172 = vmatprep.mubr.msk.f32.mxu1 %vm601_vm2, %v2791_v33  ;;  %v1018_v19 = vld [vmem:[#allocation2 + $0x30] sm:$0xff] }
 0x13d   : > { %v597_v36 = vmax.f32 %v562_v34, 0.0  ;;  %2312 = vmatprep.subr.bf16.mxu1 %v2311_v28 }
 0x13e   : > { %v566_v40 = vpop.f32.mrb[36].mxu0  ;;  %v880_v59 = vld [vmem:[#allocation2 + $0x78] sm:$0xff] }
 0x13f   : > { %619 = vst.msk [vmem:[#allocation2 + $0x88] sm:$0xff] %vm601_vm2, %v597_v36  ;;  %2173 = vmatmul.mubr.msk.f32.gmra.mrb[4].mxu1 %vm601_vm2, %v2796_v39  ;;  %v567_v43 = vadd.f32 %v2676_v58, %v566_v40  ;;  %v2118_v44 = vpop.f32.mrb[37].mxu0 }
 0x140   : > { %2314 = vmatpush3.bf16.msra.mxu1 %v2311_v28  ;;  %2191 = vmatprep.mubr.msk.f32.mxu1 %vm601_vm2, %v879_v37 }
 0x141   : > { %v598_v46 = vmax.f32 %v567_v43, 0.0  ;;  %2316 = vmatprep.subr.bf16.mxu1 %v2315_v38 }
 0x142   : > { %v571_v48 = vpop.f32.mrb[38].mxu0  ;;  %v881_v55 = vld [vmem:[#allocation2 + $0x80] sm:$0xff] }
 0x143   : > { %620 = vst.msk [vmem:[#allocation2 + $0x90] sm:$0xff] %vm601_vm2, %v598_v46  ;;  %v572_v51 = vadd.f32 %v2676_v58, %v571_v48  ;;  %v2121_v52 = vpop.f32.mrb[39].mxu0 }
 0x144   : > { %2318 = vmatpush3.bf16.msra.mxu1 %v2315_v38 }
 0x145   : > { %v599_v54 = vmax.f32 %v572_v51, 0.0  ;;  %2320 = vmatprep.subr.bf16.mxu1 %v2319_v47 }
 0x146   : > { %v882_v58 = vld [vmem:[#allocation2 + $0x88] sm:$0xff] }
 0x147   : > { %621 = vst.msk [vmem:[#allocation2 + $0x98] sm:$0xff] %vm601_vm2, %v599_v54  ;;  %2192 = vmatmul.mubr.msk.f32.vlgmr.msra.gmra.mrb[0].mxu1 %vm601_vm2, %v880_v59 }
 0x148   : > { %2194 = vmatprep.mubr.msk.f32.mxu1 %vm601_vm2, %v881_v55  ;;  %2322 = vmatpush3.bf16.msra.mxu1 %v2319_v47 }
 0x149   : > { %2324 = vmatprep.subr.bf16.mxu1 %v2323_v56 }
 0x14a   : > { %v883_v63 = vld [vmem:[#allocation2 + $0x90] sm:$0xff] }
 0x14b   : > { %2195 = vmatmul.mubr.msk.f32.gmra.mrb[2].mxu1 %vm601_vm2, %v882_v58 }
 0x14c   : > { %2326 = vmatpush3.bf16.msra.mxu1 %v2323_v56  ;;  %2197 = vmatprep.mubr.msk.f32.mxu1 %vm601_vm2, %v883_v63 }
 0x14d   : > { %2328 = vmatprep.subr.bf16.mxu1 %v2327_v62 }
 0x14e   : > { %v884_v4 = vld [vmem:[#allocation2 + $0x98] sm:$0xff] }
 0x14f   : > { %2198 = vmatmul.mubr.msk.f32.gmra.mrb[4].mxu1 %vm601_vm2, %v884_v4 }
 0x150   : > { %2330 = vmatpush3.bf16.msra.mxu1 %v2327_v62  ;;  %2216 = vmatprep.mubr.msk.f32.mxu1 %vm601_vm2, %v2764_v20  ;;  %v1152_v20 = vld [vmem:[#allocation2 + $0x68] sm:$0xff] }
 0x151   : > { %2332 = vmatprep.subr.bf16.mxu1 %v2331_v2 }
 0x154   : > { %2334 = vmatpush3.bf16.msra.mxu1 %v2331_v2 }
 0x155   : > { %2336 = vmatprep.subr.bf16.mxu1 %v2335_v9 }
 0x157   : > { %2217 = vmatmul.mubr.msk.f32.vlgmr.msra.gmra.mrb[0].mxu1 %vm601_vm2, %v2775_v24 }
 0x158   : > { %2219 = vmatprep.mubr.msk.f32.mxu1 %vm601_vm2, %v2780_v29  ;;  %2338 = vmatpush3.bf16.msra.mxu1 %v2335_v9 }
 0x159   : > { %2340 = vmatprep.subr.bf16.mxu1 %v2339_v12 }
 0x15b   : > { %2220 = vmatmul.mubr.msk.f32.gmra.mrb[2].mxu1 %vm601_vm2, %v2791_v33 }
 0x15c   : > { %2222 = vmatprep.mubr.msk.f32.mxu1 %vm601_vm2, %v2796_v39  ;;  %2342 = vmatpush3.bf16.msra.mxu1 %v2339_v12 }
 0x15d   : > { %2344 = vmatprep.subr.bf16.mxu1 %v2343_v15 }
 0x15f   : > { %2223 = vmatmul.mubr.msk.f32.gmra.mrb[4].mxu1 %vm601_vm2, %v1018_v19 }
 0x160   : > { %2346 = vmatpush3.bf16.msra.mxu1 %v2343_v15  ;;  %2241 = vmatprep.mubr.msk.f32.mxu1 %vm601_vm2, %v2708_v45  ;;  %v1918_v45 = vld [vmem:[%s3249_s4] ss:$0 sm:$0xff] }
 0x161   : > { %2348 = vmatprep.subr.bf16.mxu1 %v2347_v18 }
 0x164   : > { %2350 = vmatpush3.bf16.msra.mxu1 %v2347_v18 }
 0x167   : > { %2242 = vmatmul.mubr.msk.f32.vlgmr.msra.gmra.mrb[0].mxu1 %vm601_vm2, %v2721_v53 }
 0x168   : > { %2244 = vmatprep.mubr.msk.f32.mxu1 %vm601_vm2, %v2733_v61 }
 0x16b   : > { %2245 = vmatmul.mubr.msk.f32.gmra.mrb[2].mxu1 %vm601_vm2, %v2745_v7 }
 0x16c   : > { %2247 = vmatprep.mubr.msk.f32.mxu1 %vm601_vm2, %v2751_v13 }
 0x16f   : > { %2248 = vmatmul.mubr.msk.f32.gmra.mrb[4].mxu1 %vm601_vm2, %v1152_v20  ;;  %vm1699_vm2 = vcmask 261120  }
 0x23a   : > { %v2243_v21 = vpop.f32.mrb[0].mxu1 }
 0x23b   : > { %v1289_v22 = vadd.f32 %v2243_v21, %v1918_v45  ;;  %v1246_v23 = vpop.f32.mrb[1].mxu1 }
 0x23c   : > { %v1288_v53 = vadd.f32 %v1918_v45, %v1246_v23 }
 0x23d   : > { %v2884_v61 = vmax.f32 %v1289_v22, 0.0 }
 0x23e   : > { %v2246_v24 = vpop.f32.mrb[2].mxu1  ;;  %v2886_v7 = vmax.f32 %v1288_v53, 0.0  ;;  %v1672_v53 = vld [vmem:[%s3250_s5] sm:$0xff] }
 0x23f   : > { %v1256_v25 = vpop.f32.mrb[3].mxu1  ;;  %v1419_v13 = vsel %vm1415_vm3, %v2884_v61, -inf  ;;  %v1383_v26 = vsel %vm1379_vm4, %v2884_v61, -inf  ;;  %v1455_v29 = vsel %vm1451_vm5, %v2884_v61, -inf  ;;  %v1491_v33 = vsel %vm1487_vm6, %v2884_v61, -inf }
 0x240   : > { %1420 = vmax.xlane.f32.xlu1 %v1419_v13  ;;  %1384 = vmax.xlane.f32.xlu0 %v1383_v26  ;;  %v1380_v30 = vsel %vm1379_vm4, %v2886_v7, -inf  ;;  %v1416_v34 = vsel %vm1415_vm3, %v2886_v7, -inf  ;;  %v1527_v36 = vsel %vm1523_vm7, %v2884_v61, -inf  ;;  %v1452_v37 = vsel %vm1451_vm5, %v2886_v7, -inf  ;;  %v1676_v26 = vld [vmem:[%s3250_s5 + $0x20] sm:$0xff] }
 0x241   : > { %v1291_v38 = vadd.f32 %v2246_v24, %v1918_v45  ;;  %v1563_v39 = vsel %vm1559_vm8, %v2884_v61, -inf  ;;  %v1488_v40 = vsel %vm1487_vm6, %v2886_v7, -inf  ;;  %v1599_v42 = vsel %vm1595_vm9, %v2884_v61, -inf  ;;  %v1674_v24 = vld [vmem:[%s3250_s5 + $0x10] sm:$0xff] }
 0x242   : > { %v2249_v27 = vpop.f32.mrb[4].mxu1  ;;  %v1524_v43 = vsel %vm1523_vm7, %v2886_v7, -inf  ;;  %v1290_v44 = vadd.f32 %v1918_v45, %v1256_v25  ;;  %v1560_v46 = vsel %vm1559_vm8, %v2886_v7, -inf  ;;  %v1596_v49 = vsel %vm1595_vm9, %v2886_v7, -inf  ;;  %v1675_v25 = vld [vmem:[%s3250_s5 + $0x18] sm:$0xff] }
 0x243   : > { %v1266_v28 = vpop.f32.mrb[5].mxu1  ;;  %v2914_v41 = vmax.f32 %v1291_v38, 0.0  ;;  %v1293_v54 = vadd.f32 %v2249_v27, %v1918_v45  ;;  %v1307_v19 = vsel %vm1306_vm10, %v2886_v7, -inf  ;;  %v1310_v20 = vsel %vm1306_vm10, %v2884_v61, -inf  ;;  %v1673_v61 = vld [vmem:[%s3250_s5 + $0x8] sm:$0xff]  ;;  %v1684_v38 = vld [vmem:[%s3250_s5 + $0x60] sm:$0xff] }
 0x244   : > { %v1292_v31 = vadd.f32 %v1918_v45, %v1266_v28  ;;  %1456 = vmax.xlane.f32.xlu1 %v1455_v29  ;;  %1381 = vmax.xlane.f32.xlu0 %v1380_v30  ;;  %v2924_v48 = vmax.f32 %v1290_v44, 0.0  ;;  %v2352_v7 = vpack.c.bf16 %v1673_v61, %v1672_v53  ;;  %v2355_v13 = vpack.c.bf16 %v1675_v25, %v1674_v24  ;;  %v1677_v27 = vld [vmem:[%s3250_s5 + $0x28] sm:$0xff]  ;;  %v1678_v29 = vld [vmem:[%s3250_s5 + $0x30] sm:$0xff]  ;;  %v1679_v30 = vld [vmem:[%s3250_s5 + $0x38] sm:$0xff] }
 0x245   : > { %v1389_v47 = vsel %vm1379_vm4, %v2914_v41, -inf  ;;  %v1425_v50 = vsel %vm1415_vm3, %v2914_v41, -inf  ;;  %v1461_v51 = vsel %vm1451_vm5, %v2914_v41, -inf  ;;  %v1497_v55 = vsel %vm1487_vm6, %v2914_v41, -inf  ;;  %v3098_v53 = vld [vmem:[%s3252_s7 + $0x4] ss:$0 sm:$0xff] }
 0x246   : > { %v2896_v32 = vmax.f32 %v1292_v31, 0.0  ;;  %v1386_v52 = vsel %vm1379_vm4, %v2924_v48, -inf  ;;  %v1422_v56 = vsel %vm1415_vm3, %v2924_v48, -inf  ;;  %v1299_v59 = vmax.f32 %v1293_v54, 0.0  ;;  %2353 = vmatpush1.bf16.msra.mxu0 %v2352_v7  ;;  %v3103_v61 = vld [vmem:[%s3252_s7 + $0x3] ss:$0 sm:$0xff] }
 0x247   : > { %v1533_v57 = vsel %vm1523_vm7, %v2914_v41, -inf  ;;  %v1458_v60 = vsel %vm1451_vm5, %v2924_v48, -inf  ;;  %v1494_v58 = vsel %vm1487_vm6, %v2924_v48, -inf  ;;  %v1530_v63 = vsel %vm1523_vm7, %v2924_v48, -inf  ;;  %2354 = vmatprep.subr.bf16.mxu0 %v2433_v3 }
 0x248   : > { %1492 = vmax.xlane.f32.xlu1 %v1491_v33  ;;  %1417 = vmax.xlane.f32.xlu0 %v1416_v34  ;;  %v2904_v35 = vsel %vm1379_vm4, %v2896_v32, -inf  ;;  %v1395_v62 = vsel %vm1379_vm4, %v1299_v59, -inf  ;;  %v1431_v0 = vsel %vm1415_vm3, %v1299_v59, -inf  ;;  %v1566_v1 = vsel %vm1559_vm8, %v2924_v48, -inf  ;;  %v1681_v33 = vld [vmem:[%s3250_s5 + $0x48] sm:$0xff] }
 0x249   : > { %v1467_v2 = vsel %vm1451_vm5, %v1299_v59, -inf  ;;  %v1503_v4 = vsel %vm1487_vm6, %v1299_v59, -inf  ;;  %v1428_v5 = vsel %vm1415_vm3, %v2896_v32, -inf  ;;  %v1539_v8 = vsel %vm1523_vm7, %v1299_v59, -inf }
 0x24a   : > { %v1464_v9 = vsel %vm1451_vm5, %v2896_v32, -inf  ;;  %v1575_v10 = vsel %vm1559_vm8, %v1299_v59, -inf  ;;  %v1500_v11 = vsel %vm1487_vm6, %v2896_v32, -inf  ;;  %v1611_v12 = vsel %vm1595_vm9, %v1299_v59, -inf  ;;  %2356 = vmatpush1.bf16.msra.mxu0 %v2355_v13 }
 0x24b   : > { %v1536_v6 = vsel %vm1523_vm7, %v2896_v32, -inf  ;;  %v1572_v14 = vsel %vm1559_vm8, %v2896_v32, -inf  ;;  %v1608_v15 = vsel %vm1595_vm9, %v2896_v32, -inf  ;;  %v1569_v16 = vsel %vm1559_vm8, %v2914_v41, -inf  ;;  %2357 = vmatprep.subr.bf16.mxu0 %v2433_v3 }
 0x24c   : > { %1528 = vmax.xlane.f32.xlu1 %v1527_v36  ;;  %1453 = vmax.xlane.f32.xlu0 %v1452_v37  ;;  %v1602_v17 = vsel %vm1595_vm9, %v2924_v48, -inf  ;;  %v1605_v18 = vsel %vm1595_vm9, %v2914_v41, -inf  ;;  %v1313_v45 = vsel %vm1306_vm10, %v2924_v48, -inf  ;;  %v1322_v21 = vsel %vm1306_vm10, %v1299_v59, -inf  ;;  %v1683_v36 = vld [vmem:[%s3250_s5 + $0x58] sm:$0xff] }
 0x24d   : > { %v1316_v22 = vsel %vm1306_vm10, %v2914_v41, -inf  ;;  %v1319_v23 = vsel %vm1306_vm10, %v2896_v32, -inf  ;;  %v2358_v28 = vpack.c.bf16 %v1677_v27, %v1676_v26  ;;  %v2361_v31 = vpack.c.bf16 %v1679_v30, %v1678_v29  ;;  %v1680_v32 = vld [vmem:[%s3250_s5 + $0x40] sm:$0xff] }
 0x24e   : > { %v2364_v34 = vpack.c.bf16 %v1681_v33, %v1680_v32 }
 0x24f   : > { %2359 = vmatpush1.bf16.msra.mxu0 %v2358_v28 }
 0x250   : > { %1564 = vmax.xlane.f32.xlu1 %v1563_v39  ;;  %1489 = vmax.xlane.f32.xlu0 %v1488_v40  ;;  %v1685_v39 = vld [vmem:[%s3250_s5 + $0x68] sm:$0xff] }
 0x251   : > { %2360 = vmatprep.subr.bf16.mxu0 %v2433_v3  ;;  %v2370_v40 = vpack.c.bf16 %v1685_v39, %v1684_v38 }
 0x253   : > { %2362 = vmatpush1.bf16.msra.mxu0 %v2361_v31 }
 0x254   : > { %1600 = vmax.xlane.f32.xlu1 %v1599_v42  ;;  %1525 = vmax.xlane.f32.xlu0 %v1524_v43 }
 0x255   : > { %2363 = vmatprep.subr.bf16.mxu0 %v2433_v3 }
 0x257   : > { %2365 = vmatpush1.bf16.msra.mxu0 %v2364_v34 }
 0x258   : > { %1561 = vmax.xlane.f32.xlu0 %v1560_v46  ;;  %1390 = vmax.xlane.f32.xlu1 %v1389_v47 }
 0x259   : > { %2366 = vmatprep.subr.bf16.mxu0 %v2433_v3 }
 0x25c   : > { %1597 = vmax.xlane.f32.xlu0 %v1596_v49  ;;  %1426 = vmax.xlane.f32.xlu1 %v1425_v50 }
 0x260   : > { %1462 = vmax.xlane.f32.xlu1 %v1461_v51  ;;  %1387 = vmax.xlane.f32.xlu0 %v1386_v52 }
 0x264   : > { %1498 = vmax.xlane.f32.xlu1 %v1497_v55  ;;  %1423 = vmax.xlane.f32.xlu0 %v1422_v56 }
 0x268   : > { %1534 = vmax.xlane.f32.xlu1 %v1533_v57  ;;  %1459 = vmax.xlane.f32.xlu0 %v1458_v60 }
 0x26c   : > { %1495 = vmax.xlane.f32.xlu0 %v1494_v58  ;;  %1396 = vmax.xlane.f32.xlu1 %v1395_v62 }
 0x270   : > { %1531 = vmax.xlane.f32.xlu0 %v1530_v63  ;;  %1432 = vmax.xlane.f32.xlu1 %v1431_v0 }
 0x274   : > { %1567 = vmax.xlane.f32.xlu0 %v1566_v1  ;;  %1468 = vmax.xlane.f32.xlu1 %v1467_v2 }
 0x278   : > { %1504 = vmax.xlane.f32.xlu1 %v1503_v4  ;;  %1429 = vmax.xlane.f32.xlu0 %v1428_v5 }
 0x27c   : > { %1540 = vmax.xlane.f32.xlu1 %v1539_v8  ;;  %1465 = vmax.xlane.f32.xlu0 %v1464_v9  ;;  %v3063_v9 = vld [vmem:[%s3252_s7 + $0x1] ss:$0 sm:$0xff] }
 0x280   : > { %1576 = vmax.xlane.f32.xlu1 %v1575_v10  ;;  %1501 = vmax.xlane.f32.xlu0 %v1500_v11  ;;  %v3068_v10 = vld [vmem:[%s3252_s7] ss:$0 sm:$0xff] }
 0x284   : > { %1612 = vmax.xlane.f32.xlu1 %v1611_v12  ;;  %1537 = vmax.xlane.f32.xlu0 %v1536_v6  ;;  %v3074_v12 = vld [vmem:[%s3252_s7 + $0x5] ss:$0 sm:$0xff] }
 0x288   : > { %1573 = vmax.xlane.f32.xlu0 %v1572_v14  ;;  %1393 = vmax.xlane.f32.xlu1 %v2904_v35  ;;  %v1682_v35 = vld [vmem:[%s3250_s5 + $0x50] sm:$0xff] }
 0x289   : > { %v2367_v37 = vpack.c.bf16 %v1683_v36, %v1682_v35 }
 0x28b   : > { %2368 = vmatpush1.bf16.msra.mxu0 %v2367_v37 }
 0x28c   : > { %1609 = vmax.xlane.f32.xlu0 %v1608_v15  ;;  %1570 = vmax.xlane.f32.xlu1 %v1569_v16  ;;  %v1686_v15 = vld [vmem:[%s3250_s5 + $0x70] sm:$0xff]  ;;  %v1687_v16 = vld [vmem:[%s3250_s5 + $0x78] sm:$0xff] }
 0x28d   : > { %2369 = vmatprep.subr.bf16.mxu0 %v2433_v3 }
 0x28f   : > { %2371 = vmatpush1.bf16.msra.mxu0 %v2370_v40 }
 0x290   : > { %1603 = vmax.xlane.f32.xlu0 %v1602_v17  ;;  %1606 = vmax.xlane.f32.xlu1 %v1605_v18 }
 0x291   : > { %2372 = vmatprep.subr.bf16.mxu0 %v2433_v3 }
 0x294   : > { %1308 = vmax.xlane.f32.xlu0 %v1307_v19  ;;  %1311 = vmax.xlane.f32.xlu1 %v1310_v20  ;;  %v2373_v19 = vpack.c.bf16 %v1687_v16, %v1686_v15 }
 0x296   : > { %2374 = vmatpush1.bf16.msra.mxu0 %v2373_v19 }
 0x297   : > { %2375 = vmatprep.subr.bf16.mxu0 %v2433_v3 }
 0x298   : > { %1314 = vmax.xlane.f32.xlu0 %v1313_v45  ;;  %1323 = vmax.xlane.f32.xlu1 %v1322_v21 }
 0x29c   : > { %1317 = vmax.xlane.f32.xlu1 %v1316_v22  ;;  %1320 = vmax.xlane.f32.xlu0 %v1319_v23  ;;  %v3093_v23 = vld [vmem:[%s3252_s7 + $0x2] ss:$0 sm:$0xff] }
 0x2cd   : > { %v1421_v41 = vpop.xlane.xlu1 %1420  ;;  %v1385_v42 = vpop.xlane.xlu0 %1384 }
 0x2ce   : > { %v1435_v11 = vadd.f32 %v3063_v9, %v1421_v41  ;;  %v1399_v17 = vadd.f32 %v3063_v9, %v1385_v42 }
 0x2d0   : > { %v1441_v7 = vsel %vm1367_vm11, %v1435_v11, -inf  ;;  %v3110_v27 = vsel %vm1367_vm11, %v1399_v17, -inf }
 0x2d1   : > { %v1457_v43 = vpop.xlane.xlu1 %1456  ;;  %v1382_v44 = vpop.xlane.xlu0 %1381 }
 0x2d2   : > { %v1471_v20 = vadd.f32 %v3063_v9, %v1457_v43  ;;  %v1398_v45 = vadd.f32 %v3068_v10, %v1382_v44 }
 0x2d4   : > { %v1477_v31 = vsel %vm1367_vm11, %v1471_v20, -inf  ;;  %v3117_v32 = vsel %vm1367_vm11, %v1398_v45, -inf }
 0x2d5   : > { %v1493_v46 = vpop.xlane.xlu1 %1492  ;;  %v1418_v47 = vpop.xlane.xlu0 %1417 }
 0x2d6   : > { %v1507_v21 = vadd.f32 %v3063_v9, %v1493_v46  ;;  %v1434_v22 = vadd.f32 %v3068_v10, %v1418_v47  ;;  %v1688_v46 = vld [vmem:[%s3250_s5 + $0x80] sm:$0xff]  ;;  %v1689_v47 = vld [vmem:[%s3250_s5 + $0x88] sm:$0xff] }
 0x2d8   : > { %v1513_v33 = vsel %vm1367_vm11, %v1507_v21, -inf  ;;  %v1440_v34 = vsel %vm1367_vm11, %v1434_v22, -inf }
 0x2d9   : > { %v3034_v48 = vpop.xlane.xlu1 %1528  ;;  %v1454_v49 = vpop.xlane.xlu0 %1453 }
 0x2da   : > { %v1470_v35 = vadd.f32 %v3068_v10, %v1454_v49 }
 0x2dc   : > { %v1476_v15 = vsel %vm1367_vm11, %v1470_v35, -inf }
 0x2dd   : > { %v3036_v50 = vpop.xlane.xlu1 %1564  ;;  %v3038_v51 = vpop.xlane.xlu0 %1489 }
 0x2de   : > { %v1579_v19 = vadd.f32 %v3063_v9, %v3036_v50 }
 0x2e1   : > { %v3040_v52 = vpop.xlane.xlu1 %1600  ;;  %v3042_v54 = vpop.xlane.xlu0 %1525 }
 0x2e5   : > { %v3044_v55 = vpop.xlane.xlu0 %1561  ;;  %v3046_v56 = vpop.xlane.xlu1 %1390 }
 0x2e9   : > { %v3048_v59 = vpop.xlane.xlu0 %1597  ;;  %v1427_v57 = vpop.xlane.xlu1 %1426 }
 0x2ea   : > { %v1437_v25 = vadd.f32 %v3103_v61, %v1427_v57 }
 0x2ec   : > { %v1443_v39 = vsel %vm1367_vm11, %v1437_v25, -inf }
 0x2ed   : > { %v1463_v60 = vpop.xlane.xlu1 %1462  ;;  %v3050_v58 = vpop.xlane.xlu0 %1387 }
 0x2ee   : > { %v1473_v40 = vadd.f32 %v3103_v61, %v1463_v60  ;;  %v1543_v60 = vadd.f32 %v3063_v9, %v3034_v48 }
 0x2f0   : > { %v3153_v25 = vsel %vm1367_vm11, %v1543_v60, -inf }
 0x2f1   : > { %v3052_v62 = vpop.xlane.xlu1 %1498  ;;  %v1424_v63 = vpop.xlane.xlu0 %1423 }
 0x2f2   : > { %v1436_v24 = vadd.f32 %v3093_v23, %v1424_v63 }
 0x2f4   : > { %v1442_v36 = vsel %vm1367_vm11, %v1436_v24, -inf  ;;  %v1509_v24 = vadd.f32 %v3103_v61, %v3052_v62 }
 0x2f5   : > { %v3054_v0 = vpop.xlane.xlu1 %1534  ;;  %v1460_v1 = vpop.xlane.xlu0 %1459  ;;  %v1449_v11 = vmax.f32 %v1442_v36, %v1443_v39 }
 0x2f6   : > { %v1472_v37 = vadd.f32 %v3093_v23, %v1460_v1  ;;  %v2376_v1 = vpack.c.bf16 %v1689_v47, %v1688_v46  ;;  %v1515_v39 = vsel %vm1367_vm11, %v1509_v24, -inf }
 0x2f8   : > { %v1478_v16 = vsel %vm1367_vm11, %v1472_v37, -inf  ;;  %2377 = vmatpush1.bf16.msra.mxu0 %v2376_v1 }
 0x2f9   : > { %v1496_v2 = vpop.xlane.xlu0 %1495  ;;  %v3056_v4 = vpop.xlane.xlu1 %1396  ;;  %2378 = vmatprep.subr.bf16.mxu0 %v2433_v3  ;;  %v1542_v3 = vadd.f32 %v3068_v10, %v3042_v54 }
 0x2fa   : > { %v1508_v17 = vadd.f32 %v3093_v23, %v1496_v2  ;;  %v1403_v54 = vadd.f32 %v3074_v12, %v3056_v4  ;;  %v1691_v4 = vld [vmem:[%s3250_s5 + $0x98] sm:$0xff] }
 0x2fb   : > { %v1548_v47 = vsel %vm1367_vm11, %v1542_v3, -inf }
 0x2fc   : > { %v1514_v62 = vsel %vm1367_vm11, %v1508_v17, -inf }
 0x2fd   : > { %v3058_v5 = vpop.xlane.xlu0 %1531  ;;  %v1433_v8 = vpop.xlane.xlu1 %1432 }
 0x2fe   : > { %v1439_v18 = vadd.f32 %v3074_v12, %v1433_v8  ;;  %v1506_v8 = vadd.f32 %v3068_v10, %v3038_v51  ;;  %v1479_v51 = vsel %vm1367_vm11, %v1473_v40, -inf  ;;  %v1614_v40 = vadd.f32 %v3068_v10, %v3048_v59 }
 0x300   : > { %v1446_v28 = vsel %vm1367_vm11, %v1439_v18, -inf  ;;  %v1512_v50 = vsel %vm1367_vm11, %v1506_v8, -inf  ;;  %v1410_v8 = vsel %vm1367_vm11, %v1403_v54, -inf }
 0x301   : > { %v3076_v6 = vpop.xlane.xlu0 %1567  ;;  %v1469_v14 = vpop.xlane.xlu1 %1468  ;;  %v1447_v41 = vmax.f32 %v1441_v7, %v1446_v28  ;;  %v1578_v28 = vadd.f32 %v3068_v10, %v3044_v55 }
 0x302   : > { %v1475_v29 = vadd.f32 %v3074_v12, %v1469_v14  ;;  %v1580_v17 = vadd.f32 %v3093_v23, %v3076_v6 }
 0x304   : > { %v1482_v49 = vsel %vm1367_vm11, %v1475_v29, -inf }
 0x305   : > { %v1505_v13 = vpop.xlane.xlu1 %1504  ;;  %v1430_v26 = vpop.xlane.xlu0 %1429  ;;  %v1483_v20 = vmax.f32 %v1477_v31, %v1482_v49  ;;  %v1584_v49 = vsel %vm1367_vm11, %v1578_v28, -inf }
 0x306   : > { %v1438_v30 = vadd.f32 %v3098_v53, %v1430_v26  ;;  %v1511_v57 = vadd.f32 %v3074_v12, %v1505_v13  ;;  %v1485_v13 = vmax.f32 %v1478_v16, %v1479_v51  ;;  %v1544_v16 = vadd.f32 %v3093_v23, %v3058_v5 }
 0x308   : > { %v1444_v38 = vsel %vm1367_vm11, %v1438_v30, -inf  ;;  %v1518_v2 = vsel %vm1367_vm11, %v1511_v57, -inf  ;;  %v1401_v30 = vadd.f32 %v3103_v61, %v3046_v56  ;;  %v1400_v56 = vadd.f32 %v3093_v23, %v3050_v58 }
 0x309   : > { %v1445_v42 = vmax.f32 %v1440_v34, %v1444_v38  ;;  %v1541_v43 = vpop.xlane.xlu1 %1540  ;;  %v1466_v44 = vpop.xlane.xlu0 %1465  ;;  %v1519_v31 = vmax.f32 %v1513_v33, %v1518_v2  ;;  %v1585_v38 = vsel %vm1367_vm11, %v1579_v19, -inf  ;;  %v1521_v33 = vmax.f32 %v1514_v62, %v1515_v39 }
 0x30a   : > { %v1474_v63 = vadd.f32 %v3098_v53, %v1466_v44  ;;  %v1615_v44 = vadd.f32 %v3063_v9, %v3040_v52  ;;  %v1547_v59 = vadd.f32 %v3074_v12, %v1541_v43  ;;  %v1407_v57 = vsel %vm1367_vm11, %v1401_v30, -inf }
 0x30b   : > { %v1448_v14 = vmax.f32 %v1445_v42, %v1447_v41  ;;  %v1690_v42 = vld [vmem:[%s3250_s5 + $0x90] sm:$0xff]  ;;  %v1545_v2 = vadd.f32 %v3103_v61, %v3054_v0  ;;  %v1550_v62 = vsel %vm1367_vm11, %v1544_v16, -inf }
 0x30c   : > { %v1480_v18 = vsel %vm1367_vm11, %v1474_v63, -inf  ;;  %v2379_v58 = vpack.c.bf16 %v1691_v4, %v1690_v42  ;;  %v1554_v19 = vsel %vm1367_vm11, %v1547_v59, -inf }
 0x30d   : > { %v1481_v45 = vmax.f32 %v1476_v15, %v1480_v18  ;;  %v1577_v48 = vpop.xlane.xlu1 %1576  ;;  %v1502_v21 = vpop.xlane.xlu0 %1501  ;;  %v1450_v22 = vmax.f32 %v1448_v14, %v1449_v11  ;;  %v1620_v14 = vsel %vm1367_vm11, %v1614_v40, -inf  ;;  %v1406_v15 = vsel %vm1367_vm11, %v1400_v56, -inf  ;;  %v324_v18 = vld [vmem:[%s2557_s18 + $0xa0] sm:$0xff]  ;;  %s2439_s18 = smov 20  }
 0x30e   : > { %v1510_v7 = vadd.f32 %v3098_v53, %v1502_v21  ;;  %v1583_v46 = vadd.f32 %v3074_v12, %v1577_v48  ;;  %2380 = vmatpush1.bf16.msra.mxu0 %v2379_v58  ;;  %v1411_v21 = vmax.f32 %v3110_v27, %v1410_v8  ;;  %v1555_v3 = vmax.f32 %v3153_v25, %v1554_v19 }
 0x30f   : > { %v1484_v26 = vmax.f32 %v1481_v45, %v1483_v20  ;;  %1636 = vrot.lane.b32.xlu1 %v1450_v22, %s2436_s17  ;;  %2123 = vmatmul.mubr.msk.f32.gmra.mrb[40].mxu0 %vm346_vm1, %v324_v18  ;;  %v1551_v39 = vsel %vm1367_vm11, %v1545_v2, -inf  ;;  %vm1668_vm1 = vcmask 982016  }
 0x310   : > { %v1516_v29 = vsel %vm1367_vm11, %v1510_v7, -inf  ;;  %v1590_v20 = vsel %vm1367_vm11, %v1583_v46, -inf }
 0x311   : > { %v1517_v34 = vmax.f32 %v1512_v50, %v1516_v29  ;;  %v1613_v35 = vpop.xlane.xlu1 %1612  ;;  %v1538_v36 = vpop.xlane.xlu0 %1537  ;;  %v1486_v37 = vmax.f32 %v1484_v26, %v1485_v13  ;;  %v1413_v26 = vmax.f32 %v1406_v15, %v1407_v57  ;;  %v1591_v28 = vmax.f32 %v1585_v38, %v1590_v20 }
 0x312   : > { %v1546_v55 = vadd.f32 %v3098_v53, %v1538_v36  ;;  %v1619_v7 = vadd.f32 %v3074_v12, %v1613_v35 }
 0x313   : > { %v1520_v41 = vmax.f32 %v1517_v34, %v1519_v31  ;;  %1640 = vrot.lane.b32.xlu1 %v1486_v37, %s2437_s19 }
 0x314   : > { %v1552_v11 = vsel %vm1367_vm11, %v1546_v55, -inf  ;;  %v1626_v25 = vsel %vm1367_vm11, %v1619_v7, -inf  ;;  %v1557_v55 = vmax.f32 %v1550_v62, %v1551_v39  ;;  %v1925_v62 = vld [vmem:[%s3251_s6] ss:$0 sm:$0xff] }
 0x315   : > { %v1574_v63 = vpop.xlane.xlu0 %1573  ;;  %v1394_v1 = vpop.xlane.xlu1 %1393  ;;  %v1522_v60 = vmax.f32 %v1520_v41, %v1521_v33  ;;  %v1553_v22 = vmax.f32 %v1548_v47, %v1552_v11  ;;  %v1621_v33 = vsel %vm1367_vm11, %v1615_v44, -inf }
 0x316   : > { %v1582_v52 = vadd.f32 %v3098_v53, %v1574_v63  ;;  %v1402_v43 = vadd.f32 %v3098_v53, %v1394_v1  ;;  %v1627_v4 = vmax.f32 %v1621_v33, %v1626_v25 }
 0x317   : > { %1644 = vrot.lane.b32.xlu1 %v1522_v60, %s2438_s24  ;;  %v1556_v0 = vmax.f32 %v1553_v22, %v1555_v3 }
 0x318   : > { %v1588_v45 = vsel %vm1367_vm11, %v1582_v52, -inf  ;;  %v1408_v48 = vsel %vm1367_vm11, %v1402_v43, -inf }
 0x319   : > { %v1589_v5 = vmax.f32 %v1584_v49, %v1588_v45  ;;  %v1409_v51 = vmax.f32 %v3117_v32, %v1408_v48  ;;  %v1610_v6 = vpop.xlane.xlu0 %1609  ;;  %v1571_v24 = vpop.xlane.xlu1 %1570  ;;  %v1586_v32 = vsel %vm1367_vm11, %v1580_v17, -inf  ;;  %v1558_v47 = vmax.f32 %v1556_v0, %v1557_v55 }
 0x31a   : > { %v1618_v50 = vadd.f32 %v3098_v53, %v1610_v6  ;;  %v1581_v13 = vadd.f32 %v3103_v61, %v1571_v24 }
 0x31b   : > { %v1412_v27 = vmax.f32 %v1409_v51, %v1411_v21  ;;  %v1592_v31 = vmax.f32 %v1589_v5, %v1591_v28 }
 0x31c   : > { %v1624_v29 = vsel %vm1367_vm11, %v1618_v50, -inf  ;;  %v1587_v30 = vsel %vm1367_vm11, %v1581_v13, -inf }
 0x31d   : > { %v1593_v34 = vmax.f32 %v1586_v32, %v1587_v30  ;;  %v1604_v35 = vpop.xlane.xlu0 %1603  ;;  %v1607_v36 = vpop.xlane.xlu1 %1606  ;;  %v1414_v37 = vmax.f32 %v1412_v27, %v1413_v26  ;;  %v1625_v40 = vmax.f32 %v1620_v14, %v1624_v29 }
 0x31e   : > { %v1616_v38 = vadd.f32 %v3093_v23, %v1604_v35  ;;  %v1617_v54 = vadd.f32 %v3103_v61, %v1607_v36 }
 0x31f   : > { %1632 = vrot.lane.b32.xlu0 %v1414_v37, %s2439_s18  ;;  %v1594_v56 = vmax.f32 %v1592_v31, %v1593_v34  ;;  %v1628_v49 = vmax.f32 %v1625_v40, %v1627_v4 }
 0x320   : > { %v1622_v41 = vsel %vm1367_vm11, %v1616_v38, -inf  ;;  %v1623_v42 = vsel %vm1367_vm11, %v1617_v54, -inf }
 0x321   : > { %v1629_v59 = vmax.f32 %v1622_v41, %v1623_v42  ;;  %v1309_v46 = vpop.xlane.xlu0 %1308  ;;  %1652 = vrot.lane.b32.xlu1 %v1594_v56, %s2440_s25  ;;  %v1312_v58 = vpop.xlane.xlu1 %1311 }
 0x322   : > { %v1361_v44 = vadd.f32 %v3068_v10, %v1309_v46  ;;  %v1362_v8 = vadd.f32 %v3063_v9, %v1312_v58 }
 0x323   : > { %1648 = vrot.lane.b32.xlu0 %v1558_v47, %s2441_s26  ;;  %v1630_v1 = vmax.f32 %v1628_v49, %v1629_v59 }
 0x324   : > { %v1368_v17 = vsel %vm1367_vm11, %v1361_v44, -inf }
 0x325   : > { %v1315_v57 = vpop.xlane.xlu0 %1314  ;;  %v1324_v63 = vpop.xlane.xlu1 %1323 }
 0x326   : > { %v1366_v60 = vadd.f32 %v3074_v12, %v1324_v63  ;;  %v1363_v43 = vadd.f32 %v3093_v23, %v1315_v57  ;;  %v1369_v12 = vsel %vm1367_vm11, %v1362_v8, -inf }
 0x327   : > { %1656 = vrot.lane.b32.xlu0 %v1630_v1, %s2442_s29 }
 0x328   : > { %v1374_v14 = vsel %vm1367_vm11, %v1366_v60, -inf  ;;  %v1370_v20 = vsel %vm1367_vm11, %v1363_v43, -inf }
 0x329   : > { %v1318_v11 = vpop.xlane.xlu1 %1317  ;;  %v1321_v52 = vpop.xlane.xlu0 %1320  ;;  %v1375_v19 = vmax.f32 %v1369_v12, %v1374_v14 }
 0x32a   : > { %v1364_v15 = vadd.f32 %v3103_v61, %v1318_v11  ;;  %v1365_v16 = vadd.f32 %v3098_v53, %v1321_v52 }
 0x32c   : > { %v1371_v18 = vsel %vm1367_vm11, %v1364_v15, -inf  ;;  %v1372_v10 = vsel %vm1367_vm11, %v1365_v16, -inf }
 0x32d   : > { %v1373_v9 = vmax.f32 %v1368_v17, %v1372_v10  ;;  %v1377_v45 = vmax.f32 %v1370_v20, %v1371_v18 }
 0x32f   : > { %v1376_v23 = vmax.f32 %v1373_v9, %v1375_v19 }
 0x331   : > { %v1378_v48 = vmax.f32 %v1376_v23, %v1377_v45 }
 0x381   : > { %v1637_v21 = vpop.permute.xlu1 %1636 }
 0x385   : > { %v1641_v22 = vpop.permute.xlu1 %1640 }
 0x389   : > { %v1645_v51 = vpop.permute.xlu1 %1644 }
 0x391   : > { %v1633_v61 = vpop.permute.xlu0 %1632 }
 0x392   : > { %v1659_v53 = vsel %vm1367_vm11, %v1378_v48, %v1633_v61 }
 0x393   : > { %v1661_v5 = vsel %vm1660_vm12, %v1659_v53, %v1637_v21  ;;  %v1653_v50 = vpop.permute.xlu1 %1652 }
 0x394   : > { %v1663_v6 = vsel %vm1662_vm13, %v1661_v5, %v1641_v22 }
 0x395   : > { %v1665_v24 = vsel %vm1664_vm14, %v1663_v6, %v1645_v51  ;;  %v1649_v2 = vpop.permute.xlu0 %1648 }
 0x396   : > { %v1667_v7 = vsel %vm1666_vm15, %v1665_v24, %v1649_v2 }
 0x397   : > { %v1669_v3 = vsel %vm1668_vm1, %v1667_v7, %v1653_v50 }
 0x399   : > { %v1657_v13 = vpop.permute.xlu0 %1656 }
 0x39a   : > { %v1671_v26 = vsel %vm1670_vm0, %v1653_v50, %v1657_v13 }
 0x39b   : > { %1926 = vmatprep.mubr.msk.f32.mxu0 %vm1699_vm2, %v1671_v26 }
 0x39c   : > { %1768 = vmatmul.mubr.f32.vlgmr.msra.gmra.mrb[42].mxu0 %v1669_v3 }
 0x3e2   : > { %v576_v28 = vpop.f32.mrb[40].mxu0 }
 0x3e3   : > { %v2124_v27 = vpop.f32.mrb[41].mxu0 }
 0x46f   : > { %v1769_v32 = vpop.f32.mrb[42].mxu0 }
 0x470   : > { %v1770_v29 = vadd.f32 %v1925_v62, %v1769_v32  ;;  %v1771_v30 = vpop.f32.mrb[43].mxu0 }
 0x472   : > { %1773 = vst.msk [vmem:[%s303_s13] sm:$0xff] %vm1306_vm10, %v1770_v29 }
 0x473 PF: > { %s18_s27 = sadd.s32 1, %s2431_s27  }
 0x474   : > { %p15_p4 = scmp.ge.s32.totalorder %s18_s27, 4  }
 0x476   :  { %17 = sbr.rel (!%p15_p4) target bundleno = 1 (0x1), region = 86 }

</bundles_post_ra>
